<compile_context>
chip_gen: v5e
topology: v5e:2x2
jax: 0.10.0
libtpu: 0.0.40
codegen_flags: <defaults>
</compile_context>

<pallas_src>
import jax
import jax.numpy as jnp
from jax.experimental import pallas as pl
from jax.experimental.pallas import tpu as pltpu

LN_EPS = 1e-5  # PyTorch nn.LayerNorm default eps


def _round_up(x, m):
    return ((x + m - 1) // m) * m


def _layer_norm(x, gamma, beta):
    """Fused one-pass LayerNorm (f32).

    sum(x) and sum(x*x) are independent reductions (co-issue on the XLU),
    var = E[x^2] - mean^2, scaled by a compile-time 1/H (no jnp.mean divides).
    """
    inv_h = 1.0 / x.shape[-1]
    s = jnp.sum(x, axis=-1, keepdims=True)
    ss = jnp.sum(x * x, axis=-1, keepdims=True)
    mean = s * inv_h
    var = jnp.maximum(ss * inv_h - mean * mean, 0.0)  # clamp tiny cancellation
    inv = jax.lax.rsqrt(var + LN_EPS)
    return (x - mean) * inv * gamma + beta


def qnetwork_kernel(
    state_ref,   # [TB, num_inputs]   f32
    action_ref,  # [TB, num_actions]  f32
    w1_ref,      # [K, H]             bf16 (resident; rows = [state | action])
    w2_ref,      # [H, H]             bf16 (resident)
    vec_ref,     # [8, H]             f32  (resident, packed small vectors)
    out_ref,     # [1, TB]            f32  (lane-dense output block)
    x_scr,       # [TB, K]            bf16 scratch (in-kernel concat buffer)
):
    ni = state_ref.shape[1]

    # Packed rows: 0=b1 1=g1 2=be1 3=b2 4=g2 5=be2 6=w3_row 7=b3(broadcast)
    b1 = vec_ref[0:1, :]
    g1 = vec_ref[1:2, :]
    be1 = vec_ref[2:3, :]
    b2 = vec_ref[3:4, :]
    g2 = vec_ref[4:5, :]
    be2 = vec_ref[5:6, :]
    w3_row = vec_ref[6:7, :]
    b3 = vec_ref[7:8, 0:1]

    # In-kernel pack of [state | action] -> single MXU push for fc1
    # (the concatenated input never exists in HBM).
    x_scr[:, :ni] = state_ref[...].astype(jnp.bfloat16)
    x_scr[:, ni:] = action_ref[...].astype(jnp.bfloat16)

    # fc1 -> ln1 -> relu (bf16 MXU operands, f32 accumulation + f32 LN math)
    h1 = jnp.dot(x_scr[...], w1_ref[...], preferred_element_type=jnp.float32) + b1
    h1 = jnp.maximum(_layer_norm(h1, g1, be1), 0.0)

    # fc2 -> ln2 -> relu
    h2 = jnp.dot(h1.astype(jnp.bfloat16), w2_ref[...],
                 preferred_element_type=jnp.float32) + b2
    h2 = jnp.maximum(_layer_norm(h2, g2, be2), 0.0)

    # fc3: N=1 output -> f32 VPU multiply + lane reduction (skip the MXU),
    # emitted as a lane-dense (1, TB) row.
    q = jnp.sum(h2 * w3_row, axis=-1)                 # [TB]
    out_ref[...] = (q[None, :] + b3).astype(out_ref.dtype)


def qnetwork_forward(state, action, params, *, max_batch_tile=2048):
    """state: [B, num_inputs], action: [B, num_actions] -> Q: [B, 1]."""
    B, num_inputs = state.shape
    num_actions = action.shape[1]
    K = num_inputs + num_actions
    H = params["w2"].shape[0]

    # Batch tile: always a multiple of 128 (lane-dense output blocks + bf16
    # sublane packing), ~ceil(B/2) so the "parallel" grid has >= 2 steps
    # whenever B > 128 (both v7x TensorCores used), capped at max_batch_tile.
    # At TB=2048 the per-step VMEM footprint is only a few MiB -- far below
    # every generation's default scoped VMEM, so no vmem_limit_bytes needed.
    max_batch_tile = max(128, _round_up(max_batch_tile, 128))
    TB = min(max_batch_tile, _round_up(pl.cdiv(B, 2), 128))
    Bp = _round_up(B, TB)
    if Bp != B:
        pad = Bp - B
        state = jnp.pad(state, ((0, pad), (0, 0)))
        action = jnp.pad(action, ((0, pad), (0, 0)))

    state = state.astype(jnp.float32)
    action = action.astype(jnp.float32)

    # MXU weights in bf16; small vectors stay f32.
    # NOTE: w1 rows must be ordered [state_features; action_features] to match
    # the in-kernel pack (true for init_params; re-check for imported
    # PyTorch checkpoints).
    w1 = params["w1"].astype(jnp.bfloat16)   # [K, H]
    w2 = params["w2"].astype(jnp.bfloat16)   # [H, H]

    vec = jnp.concatenate(
        [
            params["b1"].astype(jnp.float32),
            params["g1"].astype(jnp.float32),
            params["be1"].astype(jnp.float32),
            params["b2"].astype(jnp.float32),
            params["g2"].astype(jnp.float32),
            params["be2"].astype(jnp.float32),
            params["w3"].astype(jnp.float32).reshape(1, H),
            jnp.broadcast_to(params["b3"].astype(jnp.float32).reshape(1, 1), (1, H)),
        ],
        axis=0,
    )  # [8, H]

    num_tiles = Bp // TB

    out = pl.pallas_call(
        qnetwork_kernel,
        out_shape=jax.ShapeDtypeStruct((1, Bp), jnp.float32),
        grid=(num_tiles,),
        in_specs=[
            pl.BlockSpec((TB, num_inputs), lambda i: (i, 0)),
            pl.BlockSpec((TB, num_actions), lambda i: (i, 0)),
            # Resident weights (constant index_map -> DMA'd once, stay in VMEM).
            # NOTE: if H grows well past 128, single-buffer these with
            # pipeline_mode=pl.Buffered(1) to save VMEM for larger TB.
            pl.BlockSpec((K, H), lambda i: (0, 0)),
            pl.BlockSpec((H, H), lambda i: (0, 0)),
            pl.BlockSpec((8, H), lambda i: (0, 0)),
        ],
        out_specs=pl.BlockSpec((1, TB), lambda i: (0, i)),
        scratch_shapes=[pltpu.VMEM((TB, K), jnp.bfloat16)],
        compiler_params=pltpu.CompilerParams(
            dimension_semantics=("parallel",),  # shard batch tiles across TCs
        ),
    )(state, action, w1, w2, vec)

    # Layout plumbing only: (1, Bp) row back to the module's (B, 1).
    return out.reshape(Bp, 1)[:B]


def init_params(key, num_inputs, num_actions, hidden_size):
    """Deterministic synthetic init (PyTorch-like uniform fan-in bounds).

    Weights are stored as [in_features, out_features] (transposed vs nn.Linear).
    """
    d_in = num_inputs + num_actions
    ks = jax.random.split(key, 6)

    def lin(kw, kb, fan_in, fan_out):
        bound = 1.0 / jnp.sqrt(jnp.float32(fan_in))
        w = jax.random.uniform(kw, (fan_in, fan_out), jnp.float32, -bound, bound)
        b = jax.random.uniform(kb, (1, fan_out), jnp.float32, -bound, bound)
        return w, b

    w1, b1 = lin(ks[0], ks[1], d_in, hidden_size)
    w2, b2 = lin(ks[2], ks[3], hidden_size, hidden_size)
    w3, b3 = lin(ks[4], ks[5], hidden_size, 1)

    return {
        "w1": w1, "b1": b1,
        "g1": jnp.ones((1, hidden_size), jnp.float32),
        "be1": jnp.zeros((1, hidden_size), jnp.float32),
        "w2": w2, "b2": b2,
        "g2": jnp.ones((1, hidden_size), jnp.float32),
        "be2": jnp.zeros((1, hidden_size), jnp.float32),
        "w3": w3, "b3": b3,
    }


def _ln_ref(h, g, b):
    m = h.mean(-1, keepdims=True)
    v = ((h - m) ** 2).mean(-1, keepdims=True)
    return (h - m) * jax.lax.rsqrt(v + LN_EPS) * g + b


def reference_forward_bf16(state, action, params):
    """Pure-JAX reference matching the kernel's bf16-matmul / f32-LN numerics."""
    x = jnp.concatenate([state, action], axis=1).astype(jnp.bfloat16)
    w1 = params["w1"].astype(jnp.bfloat16)
    w2 = params["w2"].astype(jnp.bfloat16)
    h = jnp.dot(x, w1, preferred_element_type=jnp.float32) + params["b1"]
    h = jnp.maximum(_ln_ref(h, params["g1"], params["be1"]), 0.0)
    h2 = jnp.dot(h.astype(jnp.bfloat16), w2,
                 preferred_element_type=jnp.float32) + params["b2"]
    h2 = jnp.maximum(_ln_ref(h2, params["g2"], params["be2"]), 0.0)
    return h2 @ params["w3"] + params["b3"]


def reference_forward_f32(state, action, params):
    """Full-f32 reference (module semantics) for a looser sanity check."""
    x = jnp.concatenate([state, action], axis=1)
    h = x @ params["w1"] + params["b1"]
    h = jnp.maximum(_ln_ref(h, params["g1"], params["be1"]), 0.0)
    h2 = h @ params["w2"] + params["b2"]
    h2 = jnp.maximum(_ln_ref(h2, params["g2"], params["be2"]), 0.0)
    return h2 @ params["w3"] + params["b3"]


if __name__ == "__main__":
    num_inputs, num_actions, hidden_size = 16, 8, 128

    key = jax.random.PRNGKey(0)
    k_state, k_action, k_params, k_state2, k_action2 = jax.random.split(key, 5)
    params = init_params(k_params, num_inputs, num_actions, hidden_size)

    # Small batch: exercises pad-to-tile (10 rows -> one 128-row tile, grid=1).
    batch = 10
    state = jax.random.normal(k_state, (batch, num_inputs), jnp.float32)
    action = jax.random.normal(k_action, (batch, num_actions), jnp.float32)

    q = qnetwork_forward(state, action, params)
    q = jax.block_until_ready(q)
    assert q.shape == (batch, 1)

    q_ref_bf16 = reference_forward_bf16(state, action, params)
    q_ref_f32 = reference_forward_f32(state, action, params)
    # Tight check vs a reference that mimics the kernel numerics.
    assert jnp.allclose(q, q_ref_bf16, atol=2e-3, rtol=2e-3), (q, q_ref_bf16)
    # Loose check vs the pure-f32 PyTorch-equivalent forward.
    assert jnp.allclose(q, q_ref_f32, atol=5e-2, rtol=5e-2), (q, q_ref_f32)

    # Larger batch: exercises the multi-tile (grid=2) lane-dense output path.
    batch2 = 200
    state2 = jax.random.normal(k_state2, (batch2, num_inputs), jnp.float32)
    action2 = jax.random.normal(k_action2, (batch2, num_actions), jnp.float32)
    q2 = jax.block_until_ready(qnetwork_forward(state2, action2, params))
    assert q2.shape == (batch2, 1)
    q2_ref = reference_forward_bf16(state2, action2, params)
    assert jnp.allclose(q2, q2_ref, atol=2e-3, rtol=2e-3), (q2, q2_ref)

    print("KERNEL_OK")
</pallas_src>

<mosaic_0001>
module attributes {stable_mosaic.version = 11 : i64} {
  func.func @qnetwork_kernel(%arg0: i32, %arg1: memref<128x16xf32, #tpu.memory_space<vmem>>, %arg2: memref<128x8xf32, #tpu.memory_space<vmem>>, %arg3: memref<24x128xbf16, #tpu.memory_space<vmem>>, %arg4: memref<128x128xbf16, #tpu.memory_space<vmem>>, %arg5: memref<8x128xf32, #tpu.memory_space<vmem>>, %arg6: memref<1x128xf32, #tpu.memory_space<vmem>>, %arg7: memref<128x24xbf16, #tpu.memory_space<vmem>>) attributes {dimension_semantics = [#tpu.dimension_semantics<parallel>], iteration_bounds = array<i64: 1>, scalar_prefetch = 0 : i64, scratch_operands = 1 : i64, tpu.core_type = #tpu.core_type<tc>, window_params = [{transform_indices = @transform_0, window_bounds = array<i64: 128, 16>}, {transform_indices = @transform_1, window_bounds = array<i64: 128, 8>}, {pipeline_mode = #tpu.pipeline_mode<synchronous>, transform_indices = @transform_2, window_bounds = array<i64: 24, 128>}, {pipeline_mode = #tpu.pipeline_mode<synchronous>, transform_indices = @transform_3, window_bounds = array<i64: 128, 128>}, {pipeline_mode = #tpu.pipeline_mode<synchronous>, transform_indices = @transform_4, window_bounds = array<i64: 8, 128>}, {transform_indices = @transform_5, window_bounds = array<i64: 1, 128>}]} {
    %c0 = arith.constant 0 : index
    %c0_0 = arith.constant 0 : index
    %0 = vector.load %arg5[%c0, %c0_0] : memref<8x128xf32, #tpu.memory_space<vmem>>, vector<1x128xf32>
    %c1 = arith.constant 1 : index
    %c0_1 = arith.constant 0 : index
    %1 = vector.load %arg5[%c1, %c0_1] : memref<8x128xf32, #tpu.memory_space<vmem>>, vector<1x128xf32>
    %c2 = arith.constant 2 : index
    %c0_2 = arith.constant 0 : index
    %2 = vector.load %arg5[%c2, %c0_2] : memref<8x128xf32, #tpu.memory_space<vmem>>, vector<1x128xf32>
    %c3 = arith.constant 3 : index
    %c0_3 = arith.constant 0 : index
    %3 = vector.load %arg5[%c3, %c0_3] : memref<8x128xf32, #tpu.memory_space<vmem>>, vector<1x128xf32>
    %c4 = arith.constant 4 : index
    %c0_4 = arith.constant 0 : index
    %4 = vector.load %arg5[%c4, %c0_4] : memref<8x128xf32, #tpu.memory_space<vmem>>, vector<1x128xf32>
    %c5 = arith.constant 5 : index
    %c0_5 = arith.constant 0 : index
    %5 = vector.load %arg5[%c5, %c0_5] : memref<8x128xf32, #tpu.memory_space<vmem>>, vector<1x128xf32>
    %c6 = arith.constant 6 : index
    %c0_6 = arith.constant 0 : index
    %6 = vector.load %arg5[%c6, %c0_6] : memref<8x128xf32, #tpu.memory_space<vmem>>, vector<1x128xf32>
    %c7 = arith.constant 7 : index
    %c0_7 = arith.constant 0 : index
    %7 = vector.load %arg5[%c7, %c0_7] : memref<8x128xf32, #tpu.memory_space<vmem>>, vector<1x1xf32>
    %c0_8 = arith.constant 0 : index
    %c0_9 = arith.constant 0 : index
    %8 = vector.load %arg1[%c0_8, %c0_9] : memref<128x16xf32, #tpu.memory_space<vmem>>, vector<128x16xf32>
    %9 = arith.truncf %8 : vector<128x16xf32> to vector<128x16xbf16>
    %c0_10 = arith.constant 0 : index
    %c0_11 = arith.constant 0 : index
    %10 = vector.load %arg7[%c0_10, %c0_11] : memref<128x24xbf16, #tpu.memory_space<vmem>>, vector<128x16xbf16>
    tpu.vector_store %arg7[%c0_10, %c0_11], %9 {strides = array<i32>} : memref<128x24xbf16, #tpu.memory_space<vmem>>, vector<128x16xbf16>,
    %c0_12 = arith.constant 0 : index
    %c0_13 = arith.constant 0 : index
    %11 = vector.load %arg2[%c0_12, %c0_13] : memref<128x8xf32, #tpu.memory_space<vmem>>, vector<128x8xf32>
    %12 = arith.truncf %11 : vector<128x8xf32> to vector<128x8xbf16>
    %c0_14 = arith.constant 0 : index
    %c16 = arith.constant 16 : index
    %13 = vector.load %arg7[%c0_14, %c16] : memref<128x24xbf16, #tpu.memory_space<vmem>>, vector<128x8xbf16>
    tpu.vector_store %arg7[%c0_14, %c16], %12 {strides = array<i32>} : memref<128x24xbf16, #tpu.memory_space<vmem>>, vector<128x8xbf16>,
    %c0_15 = arith.constant 0 : index
    %c0_16 = arith.constant 0 : index
    %14 = vector.load %arg7[%c0_15, %c0_16] : memref<128x24xbf16, #tpu.memory_space<vmem>>, vector<128x24xbf16>
    %c0_17 = arith.constant 0 : index
    %c0_18 = arith.constant 0 : index
    %15 = vector.load %arg3[%c0_17, %c0_18] : memref<24x128xbf16, #tpu.memory_space<vmem>>, vector<24x128xbf16>
    %cst = arith.constant dense<0.000000e+00> : vector<128x128xf32>
    %16 = tpu.matmul %14, %15, %cst {dimension_numbers = #tpu.dot_dimension_numbers<[1], [0], [0], [1], [0, 0, 1, 1], [], []>} : vector<128x24xbf16>, vector<24x128xbf16>, vector<128x128xf32> -> vector<128x128xf32>
    %17 = vector.broadcast %0 : vector<1x128xf32> to vector<128x128xf32>
    %18 = arith.addf %16, %17 : vector<128x128xf32>
    %cst_19 = arith.constant dense<0.000000e+00> : vector<128xf32>
    %19 = vector.multi_reduction <add>, %18, %cst_19 [1] : vector<128x128xf32> to vector<128xf32>
    %20 = vector.shape_cast %19 : vector<128xf32> to vector<128x1xf32>
    %21 = arith.mulf %18, %18 : vector<128x128xf32>
    %cst_20 = arith.constant dense<0.000000e+00> : vector<128xf32>
    %22 = vector.multi_reduction <add>, %21, %cst_20 [1] : vector<128x128xf32> to vector<128xf32>
    %23 = vector.shape_cast %22 : vector<128xf32> to vector<128x1xf32>
    %cst_21 = arith.constant 7.812500e-03 : f32
    %24 = vector.broadcast %cst_21 : f32 to vector<128x1xf32>
    %25 = arith.mulf %20, %24 : vector<128x1xf32>
    %cst_22 = arith.constant 7.812500e-03 : f32
    %26 = vector.broadcast %cst_22 : f32 to vector<128x1xf32>
    %27 = arith.mulf %23, %26 : vector<128x1xf32>
    %28 = arith.mulf %25, %25 : vector<128x1xf32>
    %29 = arith.subf %27, %28 : vector<128x1xf32>
    %cst_23 = arith.constant 0.000000e+00 : f32
    %30 = vector.broadcast %cst_23 : f32 to vector<128x1xf32>
    %31 = arith.maximumf %29, %30 : vector<128x1xf32>
    %cst_24 = arith.constant 9.99999974E-6 : f32
    %32 = vector.broadcast %cst_24 : f32 to vector<128x1xf32>
    %33 = arith.addf %31, %32 : vector<128x1xf32>
    %34 = math.rsqrt %33 : vector<128x1xf32>
    %35 = vector.broadcast %25 : vector<128x1xf32> to vector<128x128xf32>
    %36 = arith.subf %18, %35 : vector<128x128xf32>
    %37 = vector.broadcast %34 : vector<128x1xf32> to vector<128x128xf32>
    %38 = arith.mulf %36, %37 : vector<128x128xf32>
    %39 = vector.broadcast %1 : vector<1x128xf32> to vector<128x128xf32>
    %40 = arith.mulf %38, %39 : vector<128x128xf32>
    %41 = vector.broadcast %2 : vector<1x128xf32> to vector<128x128xf32>
    %42 = arith.addf %40, %41 : vector<128x128xf32>
    %cst_25 = arith.constant 0.000000e+00 : f32
    %43 = vector.broadcast %cst_25 : f32 to vector<128x128xf32>
    %44 = arith.maximumf %42, %43 : vector<128x128xf32>
    %45 = arith.truncf %44 : vector<128x128xf32> to vector<128x128xbf16>
    %c0_26 = arith.constant 0 : index
    %c0_27 = arith.constant 0 : index
    %46 = vector.load %arg4[%c0_26, %c0_27] : memref<128x128xbf16, #tpu.memory_space<vmem>>, vector<128x128xbf16>
    %cst_28 = arith.constant dense<0.000000e+00> : vector<128x128xf32>
    %47 = tpu.matmul %45, %46, %cst_28 {dimension_numbers = #tpu.dot_dimension_numbers<[1], [0], [0], [1], [0, 0, 1, 1], [], []>} : vector<128x128xbf16>, vector<128x128xbf16>, vector<128x128xf32> -> vector<128x128xf32>
    %48 = vector.broadcast %3 : vector<1x128xf32> to vector<128x128xf32>
    %49 = arith.addf %47, %48 : vector<128x128xf32>
    %cst_29 = arith.constant dense<0.000000e+00> : vector<128xf32>
    %50 = vector.multi_reduction <add>, %49, %cst_29 [1] : vector<128x128xf32> to vector<128xf32>
    %51 = vector.shape_cast %50 : vector<128xf32> to vector<128x1xf32>
    %52 = arith.mulf %49, %49 : vector<128x128xf32>
    %cst_30 = arith.constant dense<0.000000e+00> : vector<128xf32>
    %53 = vector.multi_reduction <add>, %52, %cst_30 [1] : vector<128x128xf32> to vector<128xf32>
    %54 = vector.shape_cast %53 : vector<128xf32> to vector<128x1xf32>
    %cst_31 = arith.constant 7.812500e-03 : f32
    %55 = vector.broadcast %cst_31 : f32 to vector<128x1xf32>
    %56 = arith.mulf %51, %55 : vector<128x1xf32>
    %cst_32 = arith.constant 7.812500e-03 : f32
    %57 = vector.broadcast %cst_32 : f32 to vector<128x1xf32>
    %58 = arith.mulf %54, %57 : vector<128x1xf32>
    %59 = arith.mulf %56, %56 : vector<128x1xf32>
    %60 = arith.subf %58, %59 : vector<128x1xf32>
    %cst_33 = arith.constant 0.000000e+00 : f32
    %61 = vector.broadcast %cst_33 : f32 to vector<128x1xf32>
    %62 = arith.maximumf %60, %61 : vector<128x1xf32>
    %cst_34 = arith.constant 9.99999974E-6 : f32
    %63 = vector.broadcast %cst_34 : f32 to vector<128x1xf32>
    %64 = arith.addf %62, %63 : vector<128x1xf32>
    %65 = math.rsqrt %64 : vector<128x1xf32>
    %66 = vector.broadcast %56 : vector<128x1xf32> to vector<128x128xf32>
    %67 = arith.subf %49, %66 : vector<128x128xf32>
    %68 = vector.broadcast %65 : vector<128x1xf32> to vector<128x128xf32>
    %69 = arith.mulf %67, %68 : vector<128x128xf32>
    %70 = vector.broadcast %4 : vector<1x128xf32> to vector<128x128xf32>
    %71 = arith.mulf %69, %70 : vector<128x128xf32>
    %72 = vector.broadcast %5 : vector<1x128xf32> to vector<128x128xf32>
    %73 = arith.addf %71, %72 : vector<128x128xf32>
    %cst_35 = arith.constant 0.000000e+00 : f32
    %74 = vector.broadcast %cst_35 : f32 to vector<128x128xf32>
    %75 = arith.maximumf %73, %74 : vector<128x128xf32>
    %76 = vector.broadcast %6 : vector<1x128xf32> to vector<128x128xf32>
    %77 = arith.mulf %75, %76 : vector<128x128xf32>
    %cst_36 = arith.constant dense<0.000000e+00> : vector<128xf32>
    %78 = vector.multi_reduction <add>, %77, %cst_36 [1] : vector<128x128xf32> to vector<128xf32>
    %79 = vector.shape_cast %78 : vector<128xf32> to vector<1x128xf32>
    %80 = vector.broadcast %7 : vector<1x1xf32> to vector<1x128xf32>
    %81 = arith.addf %79, %80 : vector<1x128xf32>
    %c0_37 = arith.constant 0 : index
    %c0_38 = arith.constant 0 : index
    %82 = vector.load %arg6[%c0_37, %c0_38] : memref<1x128xf32, #tpu.memory_space<vmem>>, vector<1x128xf32>
    tpu.vector_store %arg6[%c0_37, %c0_38], %81 {strides = array<i32>} : memref<1x128xf32, #tpu.memory_space<vmem>>, vector<1x128xf32>,
    return
  }
  func.func @transform_0(%arg0: i32) -> (i32, i32) {
    %c0_i32 = arith.constant 0 : i32
    %c0_i32_0 = arith.constant 0 : i32
    return %arg0, %c0_i32 : i32, i32
  }
  func.func @transform_1(%arg0: i32) -> (i32, i32) {
    %c0_i32 = arith.constant 0 : i32
    %c0_i32_0 = arith.constant 0 : i32
    return %arg0, %c0_i32 : i32, i32
  }
  func.func @transform_2(%arg0: i32) -> (i32, i32) {
    %c0_i32 = arith.constant 0 : i32
    %c0_i32_0 = arith.constant 0 : i32
    %c0_i32_1 = arith.constant 0 : i32
    return %c0_i32, %c0_i32_0 : i32, i32
  }
  func.func @transform_3(%arg0: i32) -> (i32, i32) {
    %c0_i32 = arith.constant 0 : i32
    %c0_i32_0 = arith.constant 0 : i32
    %c0_i32_1 = arith.constant 0 : i32
    return %c0_i32, %c0_i32_0 : i32, i32
  }
  func.func @transform_4(%arg0: i32) -> (i32, i32) {
    %c0_i32 = arith.constant 0 : i32
    %c0_i32_0 = arith.constant 0 : i32
    %c0_i32_1 = arith.constant 0 : i32
    return %c0_i32, %c0_i32_0 : i32, i32
  }
  func.func @transform_5(%arg0: i32) -> (i32, i32) {
    %c0_i32 = arith.constant 0 : i32
    %c0_i32_0 = arith.constant 0 : i32
    return %c0_i32, %arg0 : i32, i32
  }
}

</mosaic_0001>

<bundles_post_ra>
// kernel: tpu_custom_call.1
= control target key start
LH: loop header
LB: loop body
LE: loop exit
PB: predicated region body
PF: predicated region fallthrough
CT: control target
= control target key end

     0   :  { %s1719_s24 = smov 16   ;;  %s2605_s0 = inlined_call_operand.vmem [shape: f32[128,16], index: 0, kind: input, shape index: {}]   ;;  %s2606_s1 = inlined_call_operand.vmem [shape: f32[128,8], index: 1, kind: input, shape index: {}]   ;;  %s2607_s2 = inlined_call_operand.vmem [shape: bf16[24,128], index: 2, kind: input, shape index: {}]   ;;  %s2608_s3 = inlined_call_operand.vmem [shape: bf16[128,128], index: 3, kind: input, shape index: {}]   ;;  %s2609_s4 = inlined_call_operand.vmem [shape: f32[8,128], index: 4, kind: input, shape index: {}]   ;;  %s2610_s5 = inlined_call_operand.hbm [shape: f32[1,128], index: 5, kind: output, shape index: {}]  }
   0x1   :  { %v81_v0 = vld [vmem:[%s2606_s1 + $0x10] sm:$0xff]  ;;  %v79_v1 = vld [vmem:[%s2606_s1] sm:$0xff]  ;;  %v82_v6 = vld [vmem:[%s2606_s1 + $0x18] sm:$0xff] }
   0x2   :  { %v97_v2 = vpack.c.bf16 %v81_v0, %v81_v0  ;;  %v95_v3 = vpack.c.bf16 %v79_v1, %v79_v1  ;;  %v83_v4 = vld [vmem:[%s2606_s1 + $0x20] sm:$0xff]  ;;  %v80_v7 = vld [vmem:[%s2606_s1 + $0x8] sm:$0xff]  ;;  %v98_v9 = vpack.c.bf16 %v82_v6, %v82_v6 }
   0x3   :  { %v99_v5 = vpack.c.bf16 %v83_v4, %v83_v4  ;;  %v84_v8 = vld [vmem:[%s2606_s1 + $0x28] sm:$0xff]  ;;  %v96_v10 = vpack.c.bf16 %v80_v7, %v80_v7 }
   0x4   :  { %131 = vrot.lane.b32.xlu1 %v97_v2, %s1719_s24  ;;  %127 = vrot.lane.b32.xlu0 %v95_v3, %s1719_s24 }
   0x5   :  { %135 = vrot.lane.b32.xlu2 %v99_v5, %s1719_s24 }
   0x6   :  { %10 = vsyncpa [#allocation4], 0  ;;  %v100_v11 = vpack.c.bf16 %v84_v8, %v84_v8  ;;  %v86_v12 = vld [vmem:[%s2606_s1 + $0x38] sm:$0xff]  ;;  %v85_v13 = vld [vmem:[%s2606_s1 + $0x30] sm:$0xff]  ;;  %vm62_vm0 = vcmask 125952   ;;  %vm175_vm1 = vcmask 191616  }
   0x7   :  { %v87_v14 = vld [vmem:[%s2606_s1 + $0x40] sm:$0xff]  ;;  %v102_v15 = vpack.c.bf16 %v86_v12, %v86_v12  ;;  %v101_v16 = vpack.c.bf16 %v85_v13, %v85_v13  ;;  %v89_v18 = vld [vmem:[%s2606_s1 + $0x50] sm:$0xff]  ;;  %v88_v19 = vld [vmem:[%s2606_s1 + $0x48] sm:$0xff]  ;;  %vm286_vm2 = vcmask 1043456   ;;  %vm261_vm3 = vcmask 195584   ;;  %s1504_s16 = sshll.u32 %s2610_s5, 4  ;;  %s1505_s16 = int_to_ptr.hbm [resolvable:$true] %s1504_s16 }
   0x8   :  { %v103_v17 = vpack.c.bf16 %v87_v14, %v87_v14  ;;  %v90_v20 = vld [vmem:[%s2606_s1 + $0x58] sm:$0xff]  ;;  %v105_v21 = vpack.c.bf16 %v89_v18, %v89_v18  ;;  %v104_v22 = vpack.c.bf16 %v88_v19, %v88_v19  ;;  %v92_v24 = vld [vmem:[%s2606_s1 + $0x68] sm:$0xff]  ;;  %v91_v25 = vld [vmem:[%s2606_s1 + $0x60] sm:$0xff] }
   0x9   :  { %v106_v23 = vpack.c.bf16 %v90_v20, %v90_v20  ;;  %v108_v26 = vpack.c.bf16 %v92_v24, %v92_v24  ;;  %v107_v27 = vpack.c.bf16 %v91_v25, %v91_v25  ;;  %v94_v28 = vld [vmem:[%s2606_s1 + $0x78] sm:$0xff]  ;;  %v34_v30 = vld [vmem:[%s2605_s0 + $0x20] sm:$0xff]  ;;  %v32_v34 = vld [vmem:[%s2605_s0 + $0x10] sm:$0xff] }
   0xa   :  { %v110_v29 = vpack.c.bf16 %v94_v28, %v94_v28  ;;  %v50_v31 = vpack.c.bf16 %v34_v30, %v34_v30  ;;  %v30_v32 = vld [vmem:[%s2605_s0] sm:$0xff]  ;;  %v48_v35 = vpack.c.bf16 %v32_v34, %v32_v34  ;;  %v35_v36 = vld [vmem:[%s2605_s0 + $0x28] sm:$0xff]  ;;  %v33_v42 = vld [vmem:[%s2605_s0 + $0x18] sm:$0xff] }
   0xb   :  { %v46_v33 = vpack.c.bf16 %v30_v32, %v30_v32  ;;  %v51_v37 = vpack.c.bf16 %v35_v36, %v35_v36  ;;  %v31_v38 = vld [vmem:[%s2605_s0 + $0x8] sm:$0xff]  ;;  %v49_v44 = vpack.c.bf16 %v33_v42, %v33_v42  ;;  %v93_v46 = vld [vmem:[%s2606_s1 + $0x70] sm:$0xff]  ;;  %v38_v47 = vld [vmem:[%s2605_s0 + $0x40] sm:$0xff] }
   0xc   :  { %133 = vrot.lane.b32.xlu1 %v98_v9, %s1719_s24  ;;  %129 = vrot.lane.b32.xlu0 %v96_v10, %s1719_s24  ;;  %67 = vst.msk [vmem:[#allocation2 + $0x10] sm:$0xf] %vm62_vm0, %v50_v31  ;;  %v210_v39 = vld [vmem:[%s2607_s2 + $0x8] sm:$0xf]  ;;  %v47_v40 = vpack.c.bf16 %v31_v38, %v31_v38  ;;  %v109_v49 = vpack.c.bf16 %v93_v46, %v93_v46  ;;  %v1597_v51 = vld [vmem:[%s2607_s2] sm:$0xff] }
   0xd   :  { %137 = vrot.lane.b32.xlu2 %v100_v11, %s1719_s24  ;;  %63 = vst.msk [vmem:[#allocation2] sm:$0xf] %vm62_vm0, %v46_v33  ;;  %v257_v41 = vunpack.c.l.b16 %v210_v39  ;;  %v54_v50 = vpack.c.bf16 %v38_v47, %v38_v47  ;;  %v37_v52 = vld [vmem:[%s2605_s0 + $0x38] sm:$0xff]  ;;  %v40_v57 = vld [vmem:[%s2605_s0 + $0x50] sm:$0xff]  ;;  %v39_v1 = vld [vmem:[%s2605_s0 + $0x48] sm:$0xff] }
   0xe   :  { %65 = vst.msk [vmem:[#allocation2 + $0x8] sm:$0xf] %vm62_vm0, %v48_v35  ;;  %v53_v54 = vpack.c.bf16 %v37_v52, %v37_v52  ;;  %v41_v55 = vld [vmem:[%s2605_s0 + $0x58] sm:$0xff]  ;;  %v56_v58 = vpack.c.bf16 %v40_v57, %v40_v57  ;;  %v36_v60 = vld [vmem:[%s2605_s0 + $0x30] sm:$0xff]  ;;  %v55_v2 = vpack.c.bf16 %v39_v1, %v39_v1  ;;  %v43_v12 = vld [vmem:[%s2605_s0 + $0x68] sm:$0xff] }
   0xf   :  { %68 = vst.msk [vmem:[#allocation2 + $0x14] sm:$0xf] %vm62_vm0, %v51_v37  ;;  %v259_v45 = vpack.c.b16 %v257_v41, %v257_v41  ;;  %v57_v56 = vpack.c.bf16 %v41_v55, %v41_v55  ;;  %v52_v61 = vpack.c.bf16 %v36_v60, %v36_v60  ;;  %v42_v13 = vld [vmem:[%s2605_s0 + $0x60] sm:$0xff]  ;;  %v44_v20 = vld [vmem:[%s2605_s0 + $0x70] sm:$0xff] }
  0x10   :  { %64 = vst.msk [vmem:[#allocation2 + $0x4] sm:$0xf] %vm62_vm0, %v47_v40 }
  0x11   :  { %66 = vst.msk [vmem:[#allocation2 + $0xc] sm:$0xf] %vm62_vm0, %v49_v44  ;;  %v288_v48 = vsel %vm286_vm2, %v259_v45, 0 }
  0x12   :  { %296 = vmatpush.bf16.msra.mxu0 %v288_v48  ;;  %1606 = vmatpush.bf16.msra.mxu3 %v288_v48  ;;  %71 = vst.msk [vmem:[#allocation2 + $0x20] sm:$0xf] %vm62_vm0, %v54_v50 }
  0x13   :  { %70 = vst.msk [vmem:[#allocation2 + $0x1c] sm:$0xf] %vm62_vm0, %v53_v54 }
  0x14   :  { %141 = vrot.lane.b32.xlu1 %v102_v15, %s1719_s24  ;;  %139 = vrot.lane.b32.xlu0 %v101_v16, %s1719_s24  ;;  %74 = vst.msk [vmem:[#allocation2 + $0x2c] sm:$0xf] %vm62_vm0, %v57_v56  ;;  %v59_v15 = vpack.c.bf16 %v43_v12, %v43_v12  ;;  %v58_v16 = vpack.c.bf16 %v42_v13, %v42_v13  ;;  %v1603_v12 = vld [vmem:[%s2608_s3 + $0x28] sm:$0xff] }
  0x15   :  { %143 = vrot.lane.b32.xlu2 %v103_v17, %s1719_s24  ;;  %73 = vst.msk [vmem:[#allocation2 + $0x28] sm:$0xf] %vm62_vm0, %v56_v58 }
  0x16   :  { %297 = vmatpush.bf16.msra.mxu0 %v1597_v51  ;;  %1607 = vmatpush.bf16.msra.mxu3 %v1597_v51  ;;  %69 = vst.msk [vmem:[#allocation2 + $0x18] sm:$0xf] %vm62_vm0, %v52_v61 }
  0x17   :  { %72 = vst.msk [vmem:[#allocation2 + $0x24] sm:$0xf] %vm62_vm0, %v55_v2 }
  0x18   :  { %76 = vst.msk [vmem:[#allocation2 + $0x34] sm:$0xf] %vm62_vm0, %v59_v15  ;;  %v1602_v15 = vld [vmem:[%s2608_s3 + $0x20] sm:$0xff] }
  0x19   :  { %75 = vst.msk [vmem:[#allocation2 + $0x30] sm:$0xf] %vm62_vm0, %v58_v16 }
  0x1c   :  { %147 = vrot.lane.b32.xlu1 %v105_v21, %s1719_s24  ;;  %145 = vrot.lane.b32.xlu0 %v104_v22, %s1719_s24  ;;  %v45_v21 = vld [vmem:[%s2605_s0 + $0x78] sm:$0xff]  ;;  %v60_v22 = vpack.c.bf16 %v44_v20, %v44_v20 }
  0x1d   :  { %149 = vrot.lane.b32.xlu2 %v106_v23, %s1719_s24  ;;  %v61_v23 = vpack.c.bf16 %v45_v21, %v45_v21 }
  0x1e   :  { %77 = vst.msk [vmem:[#allocation2 + $0x38] sm:$0xf] %vm62_vm0, %v60_v22 }
  0x1f   :  { %78 = vst.msk [vmem:[#allocation2 + $0x3c] sm:$0xf] %vm62_vm0, %v61_v23  ;;  %v1600_v23 = vld [vmem:[%s2608_s3 + $0x10] sm:$0xff] }
  0x24   :  { %153 = vrot.lane.b32.xlu1 %v108_v26, %s1719_s24  ;;  %151 = vrot.lane.b32.xlu0 %v107_v27, %s1719_s24 }
  0x25   :  { %155 = vrot.lane.b32.xlu2 %v109_v49, %s1719_s24 }
  0x2c   :  { %157 = vrot.lane.b32.xlu0 %v110_v29, %s1719_s24  ;;  %v1913_v29 = vld [vmem:[%s2609_s4] ss:$0 sm:$0xff] }
  0x5f   :  { %v136_v43 = vpop.permute.xlu2 %135 }
  0x60   :  { %180 = vst.msk [vmem:[#allocation2 + $0x10] sm:$0xf] %vm175_vm1, %v136_v43 }
  0x67   :  { %v138_v53 = vpop.permute.xlu2 %137 }
  0x68   :  { %181 = vst.msk [vmem:[#allocation2 + $0x14] sm:$0xf] %vm175_vm1, %v138_v53 }
  0x6f   :  { %v144_v59 = vpop.permute.xlu2 %143  ;;  %v1591_v18 = vld [vmem:[#allocation2 + $0x10] sm:$0xff] }
  0x70   :  { %184 = vst.msk [vmem:[#allocation2 + $0x20] sm:$0xf] %vm175_vm1, %v144_v59 }
  0x76   :  { %v132_v62 = vpop.permute.xlu1 %131  ;;  %v128_v63 = vpop.permute.xlu0 %127 }
  0x77   :  { %178 = vst.msk [vmem:[#allocation2 + $0x8] sm:$0xf] %vm175_vm1, %v132_v62  ;;  %v150_v0 = vpop.permute.xlu2 %149 }
  0x78   :  { %176 = vst.msk [vmem:[#allocation2] sm:$0xf] %vm175_vm1, %v128_v63 }
  0x79   :  { %187 = vst.msk [vmem:[#allocation2 + $0x2c] sm:$0xf] %vm175_vm1, %v150_v0 }
  0x7e   :  { %v134_v3 = vpop.permute.xlu1 %133  ;;  %v130_v4 = vpop.permute.xlu0 %129 }
  0x7f   :  { %179 = vst.msk [vmem:[#allocation2 + $0xc] sm:$0xf] %vm175_vm1, %v134_v3  ;;  %v156_v26 = vpop.permute.xlu2 %155 }
  0x80   :  { %177 = vst.msk [vmem:[#allocation2 + $0x4] sm:$0xf] %vm175_vm1, %v130_v4 }
  0x81   :  { %190 = vst.msk [vmem:[#allocation2 + $0x38] sm:$0xf] %vm175_vm1, %v156_v26 }
  0x86   :  { %v142_v5 = vpop.permute.xlu1 %141  ;;  %v140_v6 = vpop.permute.xlu0 %139  ;;  %v1590_v11 = vld [vmem:[#allocation2 + $0x8] sm:$0xff] }
  0x87   :  { %183 = vst.msk [vmem:[#allocation2 + $0x1c] sm:$0xf] %vm175_vm1, %v142_v5  ;;  %v1589_v7 = vld [vmem:[#allocation2] sm:$0xff] }
  0x88   :  { %182 = vst.msk [vmem:[#allocation2 + $0x18] sm:$0xf] %vm175_vm1, %v140_v6  ;;  %1549 = vmatmul.msk.bf16.vlgmr.msra.gmra.mxu0 %vm261_vm3, %v1589_v7  ;;  %v1605_v6 = vld [vmem:[%s2608_s3 + $0x38] sm:$0xff] }
  0x89   :  { %830 = vmatpush.bf16.msra.mxu1 %v1605_v6  ;;  %1608 = vmatpush.bf16.msra.mxu2 %v1605_v6 }
  0x8e   :  { %v148_v8 = vpop.permute.xlu1 %147  ;;  %v146_v9 = vpop.permute.xlu0 %145 }
  0x8f   :  { %186 = vst.msk [vmem:[#allocation2 + $0x28] sm:$0xf] %vm175_vm1, %v148_v8  ;;  %v1592_v25 = vld [vmem:[#allocation2 + $0x18] sm:$0xff] }
  0x90   :  { %185 = vst.msk [vmem:[#allocation2 + $0x24] sm:$0xf] %vm175_vm1, %v146_v9  ;;  %v1604_v9 = vld [vmem:[%s2608_s3 + $0x30] sm:$0xff] }
  0x91   :  { %831 = vmatpush.bf16.msra.mxu1 %v1604_v9  ;;  %1609 = vmatpush.bf16.msra.mxu2 %v1604_v9 }
  0x95   :  { %832 = vmatpush.bf16.msra.mxu1 %v1603_v12  ;;  %1610 = vmatpush.bf16.msra.mxu2 %v1603_v12 }
  0x96   :  { %v1594_v10 = vld [vmem:[#allocation2 + $0x28] sm:$0xff]  ;;  %v154_v14 = vpop.permute.xlu1 %153  ;;  %v152_v17 = vpop.permute.xlu0 %151 }
  0x97   :  { %1554 = vmatmul.msk.bf16.vlgmr.msra.gmra.mxu3 %vm261_vm3, %v1594_v10  ;;  %189 = vst.msk [vmem:[#allocation2 + $0x34] sm:$0xf] %vm175_vm1, %v154_v14  ;;  %v1593_v28 = vld [vmem:[#allocation2 + $0x20] sm:$0xff] }
  0x98   :  { %1550 = vmatmul.msk.bf16.gmra.mxu0 %vm261_vm3, %v1590_v11  ;;  %188 = vst.msk [vmem:[#allocation2 + $0x30] sm:$0xf] %vm175_vm1, %v152_v17 }
  0x99   :  { %833 = vmatpush.bf16.msra.mxu1 %v1602_v15  ;;  %1611 = vmatpush.bf16.msra.mxu2 %v1602_v15  ;;  %v2047_v15 = vld [vmem:[%s2609_s4 + $0x1] ss:$0 sm:$0xff] }
  0x9e   :  { %v158_v24 = vpop.permute.xlu0 %157 }
  0x9f   :  { %v1595_v19 = vld [vmem:[#allocation2 + $0x30] sm:$0xff]  ;;  %191 = vst.msk [vmem:[#allocation2 + $0x3c] sm:$0xf] %vm175_vm1, %v158_v24 }
  0xa6   :  { %v1596_v27 = vld [vmem:[#allocation2 + $0x38] sm:$0xff] }
  0xa7   :  { %1555 = vmatmul.msk.bf16.gmra.mxu3 %vm261_vm3, %v1595_v19 }
  0xa8   :  { %1551 = vmatmul.msk.bf16.gmra.mxu0 %vm261_vm3, %v1591_v18  ;;  %v1601_v18 = vld [vmem:[%s2608_s3 + $0x18] sm:$0xff] }
  0xa9   :  { %834 = vmatpush.bf16.msra.mxu1 %v1601_v18  ;;  %1612 = vmatpush.bf16.msra.mxu2 %v1601_v18 }
  0xad   :  { %835 = vmatpush.bf16.msra.mxu1 %v1600_v23  ;;  %1613 = vmatpush.bf16.msra.mxu2 %v1600_v23 }
  0xb7   :  { %1556 = vmatmul.msk.bf16.gmra.mxu3 %vm261_vm3, %v1596_v27  ;;  %v1599_v27 = vld [vmem:[%s2608_s3 + $0x8] sm:$0xff] }
  0xb8   :  { %1552 = vmatmul.msk.bf16.gmra.mxu0 %vm261_vm3, %v1592_v25  ;;  %836 = vmatpush.bf16.msra.mxu1 %v1599_v27 }
  0xb9   :  { %1614 = vmatpush.bf16.msra.mxu2 %v1599_v27 }
  0xc8   :  { %1553 = vmatmul.msk.bf16.gmra.mxu0 %vm261_vm3, %v1593_v28 }
 0x105   :  { %v299_v30 = vpop.f32.mrf.mxu0 }
 0x106   :  { %v1916_v31 = vadd.f32 %v1913_v29, %v299_v30 }
 0x108   :  { %339 = vadd.xlane.f32.xlu1 %v1916_v31  ;;  %v371_v34 = vmul.f32 %v1916_v31, %v1916_v31 }
 0x10d   :  { %v301_v32 = vpop.f32.mrf.mxu0 }
 0x10e   :  { %v1920_v33 = vadd.f32 %v1913_v29, %v301_v32 }
 0x110   :  { %341 = vadd.xlane.f32.xlu2 %v1920_v33  ;;  %387 = vadd.xlane.f32.xlu1 %v371_v34  ;;  %v372_v37 = vmul.f32 %v1920_v33, %v1920_v33  ;;  %v1598_v34 = vld [vmem:[%s2608_s3] sm:$0xff] }
 0x111   :  { %837 = vmatpush.bf16.msra.mxu1 %v1598_v34  ;;  %1615 = vmatpush.bf16.msra.mxu2 %v1598_v34 }
 0x115   :  { %v304_v35 = vpop.f32.mrf.mxu0 }
 0x116   :  { %v1926_v36 = vadd.f32 %v1913_v29, %v304_v35 }
 0x118   :  { %389 = vadd.xlane.f32.xlu2 %v372_v37  ;;  %v373_v38 = vmul.f32 %v1926_v36, %v1926_v36 }
 0x11a   :  { %391 = vadd.xlane.f32.xlu0 %v373_v38  ;;  %v324_v39 = vpop.f32.mrf.mxu3 }
 0x11b   :  { %v1933_v40 = vadd.f32 %v1913_v29, %v324_v39 }
 0x11d   :  { %v306_v41 = vpop.f32.mrf.mxu0  ;;  %359 = vadd.xlane.f32.xlu1 %v1933_v40  ;;  %v381_v58 = vmul.f32 %v1933_v40, %v1933_v40 }
 0x11e   :  { %v1937_v42 = vadd.f32 %v1913_v29, %v306_v41 }
 0x120   :  { %v374_v45 = vmul.f32 %v1937_v42, %v1937_v42 }
 0x122   :  { %345 = vadd.xlane.f32.xlu0 %v1937_v42  ;;  %v326_v43 = vpop.f32.mrf.mxu3 }
 0x123   :  { %v1941_v44 = vadd.f32 %v1913_v29, %v326_v43 }
 0x125   :  { %v309_v46 = vpop.f32.mrf.mxu0  ;;  %361 = vadd.xlane.f32.xlu2 %v1941_v44  ;;  %393 = vadd.xlane.f32.xlu1 %v374_v45  ;;  %v382_v57 = vmul.f32 %v1941_v44, %v1941_v44 }
 0x126   :  { %v1964_v59 = vadd.f32 %v1913_v29, %v309_v46 }
 0x128   :  { %v375_v1 = vmul.f32 %v1964_v59, %v1964_v59 }
 0x12a   :  { %v329_v56 = vpop.f32.mrf.mxu3 }
 0x12b   :  { %v1968_v60 = vadd.f32 %v1913_v29, %v329_v56 }
 0x12d   :  { %v311_v47 = vpop.f32.mrf.mxu0  ;;  %343 = vadd.xlane.f32.xlu2 %v1926_v36  ;;  %v383_v3 = vmul.f32 %v1968_v60, %v1968_v60 }
 0x12e   :  { %v1971_v62 = vadd.f32 %v1913_v29, %v311_v47 }
 0x130   :  { %v376_v0 = vmul.f32 %v1971_v62, %v1971_v62 }
 0x132   :  { %v331_v61 = vpop.f32.mrf.mxu3 }
 0x133   :  { %v1974_v63 = vadd.f32 %v1913_v29, %v331_v61 }
 0x135   :  { %v314_v48 = vpop.f32.mrf.mxu0  ;;  %v384_v5 = vmul.f32 %v1974_v63, %v1974_v63 }
 0x136   :  { %v1986_v4 = vadd.f32 %v1913_v29, %v314_v48 }
 0x138   :  { %v377_v13 = vmul.f32 %v1986_v4, %v1986_v4 }
 0x13a   :  { %v334_v2 = vpop.f32.mrf.mxu3 }
 0x13b   :  { %v2002_v10 = vadd.f32 %v1913_v29, %v334_v2 }
 0x13d   :  { %v316_v49 = vpop.f32.mrf.mxu0  ;;  %v385_v16 = vmul.f32 %v2002_v10, %v2002_v10 }
 0x13e   :  { %v1994_v7 = vadd.f32 %v1913_v29, %v316_v49 }
 0x140   :  { %v378_v17 = vmul.f32 %v1994_v7, %v1994_v7 }
 0x142   :  { %v336_v8 = vpop.f32.mrf.mxu3 }
 0x143   :  { %v2005_v11 = vadd.f32 %v1913_v29, %v336_v8 }
 0x145   :  { %v319_v50 = vpop.f32.mrf.mxu0  ;;  %v386_v20 = vmul.f32 %v2005_v11, %v2005_v11 }
 0x146   :  { %v1948_v51 = vadd.f32 %v1913_v29, %v319_v50 }
 0x148   :  { %355 = vadd.xlane.f32.xlu0 %v1948_v51  ;;  %v379_v54 = vmul.f32 %v1948_v51, %v1948_v51 }
 0x14d   :  { %v321_v52 = vpop.f32.mrf.mxu0 }
 0x14e   :  { %v1952_v53 = vadd.f32 %v1913_v29, %v321_v52 }
 0x150   :  { %403 = vadd.xlane.f32.xlu0 %v379_v54  ;;  %357 = vadd.xlane.f32.xlu2 %v1952_v53  ;;  %v380_v55 = vmul.f32 %v1952_v53, %v1952_v53 }
 0x152   :  { %405 = vadd.xlane.f32.xlu1 %v380_v55 }
 0x158   :  { %409 = vadd.xlane.f32.xlu0 %v382_v57  ;;  %407 = vadd.xlane.f32.xlu2 %v381_v58 }
 0x15a   :  { %347 = vadd.xlane.f32.xlu1 %v1964_v59 }
 0x160   :  { %363 = vadd.xlane.f32.xlu0 %v1968_v60  ;;  %349 = vadd.xlane.f32.xlu2 %v1971_v62 }
 0x162   :  { %365 = vadd.xlane.f32.xlu1 %v1974_v63 }
 0x168   :  { %397 = vadd.xlane.f32.xlu0 %v376_v0  ;;  %395 = vadd.xlane.f32.xlu2 %v375_v1 }
 0x16a   :  { %411 = vadd.xlane.f32.xlu1 %v383_v3 }
 0x170   :  { %351 = vadd.xlane.f32.xlu0 %v1986_v4  ;;  %413 = vadd.xlane.f32.xlu2 %v384_v5 }
 0x172   :  { %353 = vadd.xlane.f32.xlu1 %v1994_v7 }
 0x178   :  { %369 = vadd.xlane.f32.xlu0 %v2005_v11  ;;  %367 = vadd.xlane.f32.xlu2 %v2002_v10 }
 0x17a   :  { %399 = vadd.xlane.f32.xlu1 %v377_v13 }
 0x17b   :  { %v340_v14 = vpop.xlane.xlu1 %339 }
 0x17c   :  { %v419_v19 = vmul.f32 0.0078125, %v340_v14 }
 0x17e   :  { %v451_v24 = vmul.f32 %v419_v19, %v419_v19  ;;  %v675_v6 = vsub.f32 %v1916_v31, %v419_v19 }
 0x180   :  { %415 = vadd.xlane.f32.xlu0 %v385_v16  ;;  %401 = vadd.xlane.f32.xlu2 %v378_v17 }
 0x182   :  { %417 = vadd.xlane.f32.xlu1 %v386_v20 }
 0x183   :  { %v342_v21 = vpop.xlane.xlu2 %341  ;;  %v388_v22 = vpop.xlane.xlu1 %387 }
 0x184   :  { %v435_v25 = vmul.f32 0.0078125, %v388_v22  ;;  %v420_v28 = vmul.f32 0.0078125, %v342_v21  ;;  %v2054_v22 = vld [vmem:[%s2609_s4 + $0x2] ss:$0 sm:$0xff] }
 0x186   :  { %v467_v26 = vsub.f32 %v435_v25, %v451_v24  ;;  %v452_v35 = vmul.f32 %v420_v28, %v420_v28  ;;  %v676_v31 = vsub.f32 %v1920_v33, %v420_v28 }
 0x188   :  { %v483_v29 = vmax.f32 %v467_v26, 0.0 }
 0x18a   :  { %v499_v30 = vadd.f32 1e-05, %v483_v29 }
 0x18b   :  { %v390_v32 = vpop.xlane.xlu2 %389 }
 0x18c   :  { %1629 = vrsqrt.f32 %v499_v30  ;;  %v436_v37 = vmul.f32 0.0078125, %v390_v32  ;;  %vm521_vm5 = vweird.f32 %v499_v30 }
 0x18d   :  { %v392_v38 = vpop.xlane.xlu0 %391 }
 0x18e   :  { %v468_v39 = vsub.f32 %v436_v37, %v452_v35  ;;  %v437_v20 = vmul.f32 0.0078125, %v392_v38 }
 0x190   :  { %v484_v41 = vmax.f32 %v468_v39, 0.0  ;;  %v2035_v43 = vpop.xlane.xlu1 %359 }
 0x192   :  { %v1630_v45 = vpop.eup %1629  ;;  %v500_v46 = vadd.f32 1e-05, %v484_v41 }
 0x193   :  { %v516_v47 = vmul.f32 %v1630_v45, %v499_v30  ;;  %vm522_vm4 = vweird.f32 %v1630_v45 }
 0x194   :  { %1631 = vrsqrt.f32 %v500_v46  ;;  %vm523_vm6 = vmor %vm521_vm5, %vm522_vm4  ;;  %vm531_vm8 = vweird.f32 %v500_v46 }
 0x195   :  { %v517_v48 = vmul.f32 %v1630_v45, %v516_v47  ;;  %v346_v49 = vpop.xlane.xlu0 %345 }
 0x196   :  { %v2037_v50 = vmul.f32 0.0078125, %v346_v49 }
 0x197   :  { %v518_v52 = vmul.f32 0.5, %v517_v48 }
 0x198   :  { %v2039_v54 = vpop.xlane.xlu2 %361  ;;  %v394_v55 = vpop.xlane.xlu1 %393  ;;  %v454_v61 = vmul.f32 %v2037_v50, %v2037_v50 }
 0x199   :  { %v519_v56 = vsub.f32 1.5, %v518_v52  ;;  %v438_v57 = vmul.f32 0.0078125, %v394_v55  ;;  %v678_v52 = vsub.f32 %v1937_v42, %v2037_v50 }
 0x19a   :  { %v1632_v58 = vpop.eup %1631 }
 0x19b   :  { %v520_v0 = vmul.f32 %v1630_v45, %v519_v56  ;;  %v526_v1 = vmul.f32 %v1632_v58, %v500_v46  ;;  %v470_v2 = vsub.f32 %v438_v57, %v454_v61  ;;  %vm532_vm7 = vweird.f32 %v1632_v58 }
 0x19c   :  { %vm533_vm9 = vmor %vm531_vm8, %vm532_vm7 }
 0x19d   :  { %v527_v3 = vmul.f32 %v1632_v58, %v526_v1  ;;  %v524_v5 = vsel %vm523_vm6, %v1630_v45, %v520_v0  ;;  %v486_v8 = vmax.f32 %v470_v2, 0.0 }
 0x19e   :  { %v691_v14 = vmul.f32 %v675_v6, %v524_v5 }
 0x19f   :  { %v528_v9 = vmul.f32 0.5, %v527_v3  ;;  %v502_v12 = vadd.f32 1e-05, %v486_v8 }
 0x1a0   :  { %v344_v13 = vpop.xlane.xlu2 %343  ;;  %v708_v19 = vmul.f32 %v2047_v15, %v691_v14 }
 0x1a1   :  { %v529_v16 = vsub.f32 1.5, %v528_v9  ;;  %v421_v17 = vmul.f32 0.0078125, %v344_v13  ;;  %1633 = vrsqrt.f32 %v502_v12  ;;  %vm551_vm11 = vweird.f32 %v502_v12 }
 0x1a2   :  { %v725_v30 = vadd.f32 %v2054_v22, %v708_v19 }
 0x1a3   :  { %v530_v18 = vmul.f32 %v1632_v58, %v529_v16  ;;  %v453_v21 = vmul.f32 %v421_v17, %v421_v17  ;;  %v677_v61 = vsub.f32 %v1926_v36, %v421_v17 }
 0x1a4   :  { %v741_v35 = vmax.f32 %v725_v30, 0.0 }
 0x1a5   :  { %v469_v23 = vsub.f32 %v437_v20, %v453_v21  ;;  %v534_v24 = vsel %vm533_vm9, %v1632_v58, %v530_v18 }
 0x1a6   :  { %v692_v25 = vmul.f32 %v676_v31, %v534_v24  ;;  %v2075_v24 = vmul.f32 0.0078125, %v2039_v54 }
 0x1a7   :  { %v485_v26 = vmax.f32 %v469_v23, 0.0  ;;  %v1634_v27 = vpop.eup %1633 }
 0x1a8   :  { %v709_v29 = vmul.f32 %v2047_v15, %v692_v25  ;;  %v546_v32 = vmul.f32 %v1634_v27, %v502_v12  ;;  %vm552_vm10 = vweird.f32 %v1634_v27 }
 0x1a9   :  { %v501_v34 = vadd.f32 1e-05, %v485_v26  ;;  %vm553_vm12 = vmor %vm551_vm11, %vm552_vm10 }
 0x1aa   :  { %v726_v33 = vadd.f32 %v2054_v22, %v709_v29  ;;  %v547_v28 = vmul.f32 %v1634_v27, %v546_v32  ;;  %v462_v32 = vmul.f32 %v2075_v24, %v2075_v24 }
 0x1ab   :  { %1635 = vrsqrt.f32 %v501_v34  ;;  %vm541_vm14 = vweird.f32 %v501_v34 }
 0x1ac   :  { %v742_v37 = vmax.f32 %v726_v33, 0.0  ;;  %v548_v38 = vmul.f32 0.5, %v547_v28 }
 0x1ae   :  { %v757_v39 = vpack.c.bf16 %v742_v37, %v741_v35  ;;  %v549_v41 = vsub.f32 1.5, %v548_v38 }
 0x1b0   :  { %838 = vmatmul.bf16.vlgmr.msra.gmra.mxu1 %v757_v39  ;;  %v550_v46 = vmul.f32 %v1634_v27, %v549_v41 }
 0x1b1   :  { %v1636_v45 = vpop.eup %1635 }
 0x1b2   :  { %v536_v47 = vmul.f32 %v1636_v45, %v501_v34  ;;  %v554_v49 = vsel %vm553_vm12, %v1634_v27, %v550_v46  ;;  %vm542_vm13 = vweird.f32 %v1636_v45  ;;  %v2078_v27 = vmul.f32 0.0078125, %v2035_v43 }
 0x1b3   :  { %v694_v56 = vmul.f32 %v678_v52, %v554_v49  ;;  %vm543_vm15 = vmor %vm541_vm14, %vm542_vm13 }
 0x1b4   :  { %v537_v48 = vmul.f32 %v1636_v45, %v536_v47  ;;  %v461_v28 = vmul.f32 %v2078_v27, %v2078_v27 }
 0x1b5   :  { %v711_v1 = vmul.f32 %v2047_v15, %v694_v56 }
 0x1b6   :  { %v538_v55 = vmul.f32 0.5, %v537_v48 }
 0x1b7   :  { %v728_v6 = vadd.f32 %v2054_v22, %v711_v1 }
 0x1b8   :  { %v539_v57 = vsub.f32 1.5, %v538_v55 }
 0x1b9   :  { %v744_v13 = vmax.f32 %v728_v6, 0.0 }
 0x1ba   :  { %v540_v58 = vmul.f32 %v1636_v45, %v539_v57 }
 0x1bb   :  { %v356_v0 = vpop.xlane.xlu0 %355 }
 0x1bc   :  { %v544_v2 = vsel %vm543_vm15, %v1636_v45, %v540_v58  ;;  %v2065_v8 = vmul.f32 0.0078125, %v356_v0 }
 0x1bd   :  { %v693_v3 = vmul.f32 %v677_v61, %v544_v2 }
 0x1be   :  { %v459_v36 = vmul.f32 %v2065_v8, %v2065_v8  ;;  %v683_v1 = vsub.f32 %v1948_v51, %v2065_v8 }
 0x1bf   :  { %v710_v5 = vmul.f32 %v2047_v15, %v693_v3 }
 0x1c1   :  { %v727_v42 = vadd.f32 %v2054_v22, %v710_v5 }
 0x1c3   :  { %v404_v50 = vpop.xlane.xlu0 %403  ;;  %v358_v9 = vpop.xlane.xlu2 %357  ;;  %v743_v12 = vmax.f32 %v727_v42, 0.0 }
 0x1c4   :  { %v443_v14 = vmul.f32 0.0078125, %v404_v50  ;;  %v2070_v16 = vmul.f32 0.0078125, %v358_v9 }
 0x1c5   :  { %v406_v17 = vpop.xlane.xlu1 %405  ;;  %v758_v18 = vpack.c.bf16 %v744_v13, %v743_v12 }
 0x1c6   :  { %v475_v20 = vsub.f32 %v443_v14, %v459_v36  ;;  %v460_v21 = vmul.f32 %v2070_v16, %v2070_v16  ;;  %v444_v31 = vmul.f32 0.0078125, %v406_v17  ;;  %v684_v50 = vsub.f32 %v1952_v53, %v2070_v16 }
 0x1c7   :  { %843 = vmatmul.bf16.gmra.mxu1 %v758_v18 }
 0x1c8   :  { %v491_v19 = vmax.f32 %v475_v20, 0.0  ;;  %v476_v23 = vsub.f32 %v444_v31, %v460_v21 }
 0x1ca   :  { %v507_v25 = vadd.f32 1e-05, %v491_v19  ;;  %v492_v26 = vmax.f32 %v476_v23, 0.0 }
 0x1cb   :  { %v410_v29 = vpop.xlane.xlu0 %409  ;;  %v408_v30 = vpop.xlane.xlu2 %407 }
 0x1cc   :  { %1637 = vrsqrt.f32 %v507_v25  ;;  %v508_v34 = vadd.f32 1e-05, %v492_v26  ;;  %v446_v33 = vmul.f32 0.0078125, %v410_v29  ;;  %v445_v35 = vmul.f32 0.0078125, %v408_v30 }
 0x1cd   :  { %v348_v37 = vpop.xlane.xlu1 %347  ;;  %vm601_vm1 = vweird.f32 %v507_v25 }
 0x1ce   :  { %1639 = vrsqrt.f32 %v508_v34  ;;  %v478_v54 = vsub.f32 %v446_v33, %v462_v32  ;;  %v477_v38 = vsub.f32 %v445_v35, %v461_v28  ;;  %v2090_v58 = vmul.f32 0.0078125, %v348_v37 }
 0x1cf   :  { %vm611_vm2 = vweird.f32 %v508_v34 }
 0x1d0   :  { %v494_v39 = vmax.f32 %v478_v54, 0.0  ;;  %v493_v41 = vmax.f32 %v477_v38, 0.0  ;;  %v455_v9 = vmul.f32 %v2090_v58, %v2090_v58 }
 0x1d2   :  { %v1638_v43 = vpop.eup %1637  ;;  %v2084_v45 = vadd.f32 1e-05, %v494_v39  ;;  %v2086_v47 = vadd.f32 1e-05, %v493_v41 }
 0x1d3   :  { %v596_v46 = vmul.f32 %v1638_v43, %v507_v25  ;;  %v364_v48 = vpop.xlane.xlu0 %363  ;;  %v350_v49 = vpop.xlane.xlu2 %349  ;;  %vm602_vm0 = vweird.f32 %v1638_v43 }
 0x1d4   :  { %v1640_v52 = vpop.eup %1639  ;;  %1641 = vrsqrt.f32 %v2084_v45  ;;  %v2094_v2 = vmul.f32 0.0078125, %v350_v49  ;;  %v2096_v6 = vmul.f32 0.0078125, %v364_v48  ;;  %vm2109_vm4 = vmor %vm601_vm1, %vm602_vm0  ;;  %vm621_vm7 = vweird.f32 %v2086_v47 }
 0x1d5   :  { %v597_v55 = vmul.f32 %v1638_v43, %v596_v46  ;;  %v606_v56 = vmul.f32 %v1640_v52, %v508_v34  ;;  %1643 = vrsqrt.f32 %v2086_v47  ;;  %v366_v57 = vpop.xlane.xlu1 %365  ;;  %vm612_vm3 = vweird.f32 %v1640_v52 }
 0x1d6   :  { %v456_v16 = vmul.f32 %v2094_v2, %v2094_v2  ;;  %v463_v19 = vmul.f32 %v2096_v6, %v2096_v6  ;;  %vm613_vm5 = vmor %vm611_vm2, %vm612_vm3  ;;  %v2124_v28 = vmul.f32 0.0078125, %v366_v57  ;;  %vm631_vm10 = vweird.f32 %v2084_v45 }
 0x1d7   :  { %v598_v61 = vmul.f32 0.5, %v597_v55  ;;  %v607_v0 = vmul.f32 %v1640_v52, %v606_v56 }
 0x1d9   :  { %v599_v3 = vsub.f32 1.5, %v598_v61  ;;  %v608_v5 = vmul.f32 0.5, %v607_v0 }
 0x1da   :  { %v2098_v42 = vpop.eup %1641 }
 0x1db   :  { %v2104_v12 = vpop.eup %1643  ;;  %v600_v51 = vmul.f32 %v1638_v43, %v599_v3  ;;  %v609_v8 = vsub.f32 1.5, %v608_v5  ;;  %v626_v13 = vmul.f32 %v2098_v42, %v2084_v45  ;;  %v398_v36 = vpop.xlane.xlu0 %397  ;;  %vm632_vm8 = vweird.f32 %v2098_v42 }
 0x1dc   :  { %v396_v14 = vpop.xlane.xlu2 %395  ;;  %v616_v53 = vmul.f32 %v2104_v12, %v2086_v47  ;;  %v440_v18 = vmul.f32 0.0078125, %v398_v36  ;;  %vm622_vm6 = vweird.f32 %v2104_v12  ;;  %v685_v36 = vsub.f32 %v1933_v40, %v2078_v27  ;;  %vm633_vm11 = vmor %vm631_vm10, %vm632_vm8 }
 0x1dd   :  { %v439_v20 = vmul.f32 0.0078125, %v396_v14  ;;  %v610_v21 = vmul.f32 %v1640_v52, %v609_v8  ;;  %v627_v31 = vmul.f32 %v2098_v42, %v626_v13  ;;  %v412_v23 = vpop.xlane.xlu1 %411  ;;  %v604_v25 = vsel %vm2109_vm4, %v1638_v43, %v600_v51  ;;  %vm2141_vm9 = vmor %vm621_vm7, %vm622_vm6 }
 0x1de   :  { %v617_v26 = vmul.f32 %v2104_v12, %v616_v53  ;;  %v472_v29 = vsub.f32 %v440_v18, %v456_v16  ;;  %v447_v32 = vmul.f32 0.0078125, %v412_v23  ;;  %v699_v37 = vmul.f32 %v683_v1, %v604_v25 }
 0x1df   :  { %v471_v30 = vsub.f32 %v439_v20, %v455_v9  ;;  %v628_v33 = vmul.f32 0.5, %v627_v31  ;;  %v614_v35 = vsel %vm613_vm5, %v1640_v52, %v610_v21  ;;  %v464_v51 = vmul.f32 %v2124_v28, %v2124_v28 }
 0x1e0   :  { %v618_v54 = vmul.f32 0.5, %v617_v26  ;;  %v488_v38 = vmax.f32 %v472_v29, 0.0  ;;  %v479_v41 = vsub.f32 %v447_v32, %v463_v19  ;;  %v700_v43 = vmul.f32 %v684_v50, %v614_v35 }
 0x1e1   :  { %v487_v39 = vmax.f32 %v471_v30, 0.0  ;;  %v629_v46 = vsub.f32 1.5, %v628_v33  ;;  %v716_v34 = vmul.f32 %v2047_v15, %v699_v37  ;;  %v686_v14 = vsub.f32 %v1941_v44, %v2075_v24 }
 0x1e2   :  { %v619_v48 = vsub.f32 1.5, %v618_v54  ;;  %v2128_v49 = vadd.f32 1e-05, %v488_v38  ;;  %v495_v56 = vmax.f32 %v479_v41, 0.0  ;;  %v717_v61 = vmul.f32 %v2047_v15, %v700_v43 }
 0x1e3   :  { %v2130_v55 = vadd.f32 1e-05, %v487_v39  ;;  %v352_v52 = vpop.xlane.xlu0 %351  ;;  %v733_v1 = vadd.f32 %v2054_v22, %v716_v34  ;;  %v630_v3 = vmul.f32 %v2098_v42, %v629_v46  ;;  %v679_v31 = vsub.f32 %v1964_v59, %v2090_v58 }
 0x1e4   :  { %v414_v57 = vpop.xlane.xlu2 %413  ;;  %v620_v0 = vmul.f32 %v2104_v12, %v619_v48  ;;  %1645 = vrsqrt.f32 %v2128_v49  ;;  %v2146_v47 = vadd.f32 1e-05, %v495_v56  ;;  %v734_v8 = vadd.f32 %v2054_v22, %v717_v61 }
 0x1e5   :  { %1647 = vrsqrt.f32 %v2130_v55  ;;  %v448_v50 = vmul.f32 0.0078125, %v414_v57  ;;  %v354_v9 = vpop.xlane.xlu1 %353  ;;  %v749_v53 = vmax.f32 %v733_v1, 0.0  ;;  %v634_v18 = vsel %vm633_vm11, %v2098_v42, %v630_v3 }
 0x1e6   :  { %v624_v13 = vsel %vm2141_vm9, %v2104_v12, %v620_v0  ;;  %1649 = vrsqrt.f32 %v2146_v47  ;;  %v750_v16 = vmax.f32 %v734_v8, 0.0  ;;  %v702_v27 = vmul.f32 %v686_v14, %v634_v18 }
 0x1e7   :  { %v480_v17 = vsub.f32 %v448_v50, %v464_v51  ;;  %v701_v20 = vmul.f32 %v685_v36, %v624_v13  ;;  %v2171_v24 = vmul.f32 0.0078125, %v352_v52  ;;  %v680_v42 = vsub.f32 %v1971_v62, %v2094_v2 }
 0x1e8   :  { %v761_v40 = vpack.c.bf16 %v750_v16, %v749_v53  ;;  %v2179_v29 = vmul.f32 0.0078125, %v354_v9  ;;  %vm571_vm12 = vweird.f32 %v2128_v49  ;;  %v719_v37 = vmul.f32 %v2047_v15, %v702_v27 }
 0x1e9   :  { %v496_v21 = vmax.f32 %v480_v17, 0.0  ;;  %v718_v35 = vmul.f32 %v2047_v15, %v701_v20  ;;  %vm561_vm13 = vweird.f32 %v2130_v55  ;;  %v457_v41 = vmul.f32 %v2171_v24, %v2171_v24 }
 0x1ea   :  { %v2163_v12 = vpop.eup %1645  ;;  %858 = vmatmul.bf16.vlgmr.msra.gmra.mxu2 %v761_v40  ;;  %v458_v56 = vmul.f32 %v2179_v29, %v2179_v29  ;;  %vm641_vm15 = vweird.f32 %v2146_v47  ;;  %v736_v0 = vadd.f32 %v2054_v22, %v719_v37 }
 0x1eb   :  { %v2165_v45 = vpop.eup %1647  ;;  %v566_v44 = vmul.f32 %v2163_v12, %v2128_v49  ;;  %v370_v19 = vpop.xlane.xlu0 %369  ;;  %v2177_v26 = vadd.f32 1e-05, %v496_v21  ;;  %vm572_vm14 = vweird.f32 %v2163_v12  ;;  %v735_v61 = vadd.f32 %v2054_v22, %v718_v35 }
 0x1ec   :  { %v368_v23 = vpop.xlane.xlu2 %367  ;;  %v556_v25 = vmul.f32 %v2165_v45, %v2130_v55  ;;  %v2181_v30 = vpop.eup %1649  ;;  %v2194_v46 = vmul.f32 0.0078125, %v370_v19  ;;  %vm562_vm0 = vweird.f32 %v2165_v45  ;;  %vm2217_vm2 = vmor %vm571_vm12, %vm572_vm14 }
 0x1ed   :  { %v567_v32 = vmul.f32 %v2163_v12, %v566_v44  ;;  %v400_v33 = vpop.xlane.xlu1 %399  ;;  %v636_v38 = vmul.f32 %v2181_v30, %v2146_v47  ;;  %1651 = vrsqrt.f32 %v2177_v26  ;;  %v2196_v43 = vmul.f32 0.0078125, %v368_v23  ;;  %vm563_vm3 = vmor %vm561_vm13, %vm562_vm0 }
 0x1ee   :  { %v557_v54 = vmul.f32 %v2165_v45, %v556_v25  ;;  %v441_v57 = vmul.f32 0.0078125, %v400_v33  ;;  %vm642_vm1 = vweird.f32 %v2181_v30  ;;  %v466_v50 = vmul.f32 %v2194_v46, %v2194_v46 }
 0x1ef   :  { %v568_v39 = vmul.f32 0.5, %v567_v32  ;;  %v637_v48 = vmul.f32 %v2181_v30, %v636_v38  ;;  %v465_v9 = vmul.f32 %v2196_v43, %v2196_v43  ;;  %v751_v27 = vmax.f32 %v735_v61, 0.0  ;;  %vm2244_vm4 = vmor %vm641_vm15, %vm642_vm1 }
 0x1f0   :  { %v558_v34 = vmul.f32 0.5, %v557_v54  ;;  %v473_v51 = vsub.f32 %v441_v57, %v457_v41  ;;  %v752_v44 = vmax.f32 %v736_v0, 0.0  ;;  %v687_v47 = vsub.f32 %v1968_v60, %v2096_v6 }
 0x1f1   :  { %v569_v52 = vsub.f32 1.5, %v568_v39  ;;  %v638_v3 = vmul.f32 0.5, %v637_v48  ;;  %vm651_vm6 = vweird.f32 %v2177_v26 }
 0x1f2   :  { %v559_v1 = vsub.f32 1.5, %v558_v34  ;;  %v489_v21 = vmax.f32 %v473_v51, 0.0  ;;  %v762_v34 = vpack.c.bf16 %v752_v44, %v751_v27  ;;  %v681_v44 = vsub.f32 %v1986_v4, %v2171_v24 }
 0x1f3   :  { %v570_v5 = vmul.f32 %v2163_v12, %v569_v52  ;;  %v416_v8 = vpop.xlane.xlu0 %415  ;;  %v1652_v36 = vpop.eup %1651  ;;  %v639_v17 = vsub.f32 1.5, %v638_v3  ;;  %v682_v24 = vsub.f32 %v1994_v7, %v2179_v29 }
 0x1f4   :  { %v402_v13 = vpop.xlane.xlu2 %401  ;;  %v560_v14 = vmul.f32 %v2165_v45, %v559_v1  ;;  %v449_v53 = vmul.f32 0.0078125, %v416_v8  ;;  %v646_v20 = vmul.f32 %v1652_v36, %v2177_v26  ;;  %v2227_v33 = vadd.f32 1e-05, %v489_v21 }
 0x1f5   :  { %v442_v16 = vmul.f32 0.0078125, %v402_v13  ;;  %v418_v40 = vpop.xlane.xlu1 %417  ;;  %v640_v19 = vmul.f32 %v2181_v30, %v639_v17  ;;  %v574_v37 = vsel %vm2217_vm2, %v2163_v12, %v570_v5  ;;  %vm652_vm5 = vweird.f32 %v1652_v36 }
 0x1f6   :  { %v481_v23 = vsub.f32 %v449_v53, %v465_v9  ;;  %v450_v49 = vmul.f32 0.0078125, %v418_v40  ;;  %v647_v32 = vmul.f32 %v1652_v36, %v646_v20  ;;  %v564_v35 = vsel %vm563_vm3, %v2165_v45, %v560_v14  ;;  %vm653_vm7 = vmor %vm651_vm6, %vm652_vm5 }
 0x1f7   :  { %v474_v25 = vsub.f32 %v442_v16, %v458_v56  ;;  %v695_v55 = vmul.f32 %v679_v31, %v564_v35  ;;  %1653 = vrsqrt.f32 %v2227_v33  ;;  %v696_v48 = vmul.f32 %v680_v42, %v574_v37 }
 0x1f8   :  { %v497_v54 = vmax.f32 %v481_v23, 0.0  ;;  %v482_v39 = vsub.f32 %v450_v49, %v466_v50  ;;  %v648_v41 = vmul.f32 0.5, %v647_v32  ;;  %v644_v2 = vsel %vm2244_vm4, %v2181_v30, %v640_v19 }
 0x1f9   :  { %v490_v38 = vmax.f32 %v474_v25, 0.0  ;;  %v712_v31 = vmul.f32 %v2047_v15, %v695_v55  ;;  %v713_v62 = vmul.f32 %v2047_v15, %v696_v48  ;;  %v688_v30 = vsub.f32 %v1974_v63, %v2124_v28 }
 0x1fa   :  { %v2248_v45 = vadd.f32 1e-05, %v497_v54  ;;  %v498_v58 = vmax.f32 %v482_v39, 0.0  ;;  %v649_v56 = vsub.f32 1.5, %v648_v41  ;;  %863 = vmatmul.bf16.gmra.mxu2 %v762_v34  ;;  %v703_v60 = vmul.f32 %v687_v47, %v644_v2 }
 0x1fb   :  { %v2250_v59 = vadd.f32 1e-05, %v490_v38  ;;  %v729_v57 = vadd.f32 %v2054_v22, %v712_v31  ;;  %v730_v61 = vadd.f32 %v2054_v22, %v713_v62  ;;  %vm581_vm9 = vweird.f32 %v2227_v33 }
 0x1fc   :  { %1655 = vrsqrt.f32 %v2248_v45  ;;  %v2261_v42 = vadd.f32 1e-05, %v498_v58  ;;  %v650_v52 = vmul.f32 %v1652_v36, %v649_v56  ;;  %v720_v50 = vmul.f32 %v2047_v15, %v703_v60 }
 0x1fd   :  { %1657 = vrsqrt.f32 %v2250_v59  ;;  %v1654_v6 = vpop.eup %1653  ;;  %v745_v26 = vmax.f32 %v729_v57, 0.0  ;;  %v746_v0 = vmax.f32 %v730_v61, 0.0  ;;  %vm661_vm11 = vweird.f32 %v2248_v45 }
 0x1fe   :  { %1659 = vrsqrt.f32 %v2261_v42  ;;  %v654_v1 = vsel %vm653_vm7, %v1652_v36, %v650_v52  ;;  %v576_v3 = vmul.f32 %v1654_v6, %v2227_v33  ;;  %v737_v36 = vadd.f32 %v2054_v22, %v720_v50 }
 0x1ff   :  { %v704_v5 = vmul.f32 %v688_v30, %v654_v1  ;;  %v759_v9 = vpack.c.bf16 %v746_v0, %v745_v26  ;;  %vm582_vm8 = vweird.f32 %v1654_v6  ;;  %v689_v33 = vsub.f32 %v2002_v10, %v2196_v43 }
 0x200   :  { %v577_v8 = vmul.f32 %v1654_v6, %v576_v3  ;;  %v753_v32 = vmax.f32 %v737_v36, 0.0  ;;  %vm583_vm10 = vmor %vm581_vm9, %vm582_vm8  ;;  %vm591_vm0 = vweird.f32 %v2250_v59  ;;  %vm671_vm2 = vweird.f32 %v2261_v42 }
 0x201   :  { %v721_v13 = vmul.f32 %v2047_v15, %v704_v5  ;;  %848 = vmatmul.bf16.gmra.mxu1 %v759_v9  ;;  %v690_v58 = vsub.f32 %v2005_v11, %v2194_v46 }
 0x202   :  { %v1656_v51 = vpop.eup %1655  ;;  %v578_v17 = vmul.f32 0.5, %v577_v8 }
 0x203   :  { %v1658_v14 = vpop.eup %1657  ;;  %v656_v63 = vmul.f32 %v1656_v51, %v2248_v45  ;;  %v738_v16 = vadd.f32 %v2054_v22, %v721_v13  ;;  %vm662_vm12 = vweird.f32 %v1656_v51 }
 0x204   :  { %v1660_v28 = vpop.eup %1659  ;;  %v586_v53 = vmul.f32 %v1658_v14, %v2250_v59  ;;  %v579_v21 = vsub.f32 1.5, %v578_v17  ;;  %vm592_vm13 = vweird.f32 %v1658_v14  ;;  %vm663_vm15 = vmor %vm661_vm11, %vm662_vm12 }
 0x205   :  { %v657_v18 = vmul.f32 %v1656_v51, %v656_v63  ;;  %v666_v20 = vmul.f32 %v1660_v28, %v2261_v42  ;;  %v754_v27 = vmax.f32 %v738_v16, 0.0  ;;  %vm672_vm14 = vweird.f32 %v1660_v28  ;;  %vm593_vm1 = vmor %vm591_vm0, %vm592_vm13 }
 0x206   :  { %v587_v40 = vmul.f32 %v1658_v14, %v586_v53  ;;  %v580_v25 = vmul.f32 %v1654_v6, %v579_v21  ;;  %vm673_vm3 = vmor %vm671_vm2, %vm672_vm14 }
 0x207   :  { %v658_v19 = vmul.f32 0.5, %v657_v18  ;;  %v667_v23 = vmul.f32 %v1660_v28, %v666_v20  ;;  %v763_v38 = vpack.c.bf16 %v754_v27, %v753_v32 }
 0x208   :  { %v588_v49 = vmul.f32 0.5, %v587_v40  ;;  %v584_v39 = vsel %vm583_vm10, %v1654_v6, %v580_v25  ;;  %v2300_v6 = vld [vmem:[%s2609_s4 + $0x3] ss:$0 sm:$0xff] }
 0x209   :  { %v659_v35 = vsub.f32 1.5, %v658_v19  ;;  %v668_v37 = vmul.f32 0.5, %v667_v23  ;;  %v697_v4 = vmul.f32 %v681_v44, %v584_v39 }
 0x20a   :  { %v589_v54 = vsub.f32 1.5, %v588_v49  ;;  %868 = vmatmul.bf16.gmra.mxu2 %v763_v38 }
 0x20b   :  { %v660_v55 = vmul.f32 %v1656_v51, %v659_v35  ;;  %v669_v41 = vsub.f32 1.5, %v668_v37  ;;  %v714_v12 = vmul.f32 %v2047_v15, %v697_v4 }
 0x20c   :  { %v590_v34 = vmul.f32 %v1658_v14, %v589_v54 }
 0x20d   :  { %v670_v48 = vmul.f32 %v1660_v28, %v669_v41  ;;  %v664_v45 = vsel %vm663_vm15, %v1656_v51, %v660_v55  ;;  %v731_v62 = vadd.f32 %v2054_v22, %v714_v12 }
 0x20e   :  { %v594_v7 = vsel %vm593_vm1, %v1658_v14, %v590_v34  ;;  %v705_v29 = vmul.f32 %v689_v33, %v664_v45 }
 0x20f   :  { %v698_v31 = vmul.f32 %v682_v24, %v594_v7  ;;  %v674_v10 = vsel %vm673_vm3, %v1660_v28, %v670_v48  ;;  %v747_v46 = vmax.f32 %v731_v62, 0.0 }
 0x210   :  { %v706_v43 = vmul.f32 %v690_v58, %v674_v10  ;;  %v722_v56 = vmul.f32 %v2047_v15, %v705_v29 }
 0x211   :  { %v715_v59 = vmul.f32 %v2047_v15, %v698_v31 }
 0x212   :  { %v723_v2 = vmul.f32 %v2047_v15, %v706_v43  ;;  %v739_v47 = vadd.f32 %v2054_v22, %v722_v56 }
 0x213   :  { %v732_v42 = vadd.f32 %v2054_v22, %v715_v59 }
 0x214   :  { %v740_v11 = vadd.f32 %v2054_v22, %v723_v2  ;;  %v755_v57 = vmax.f32 %v739_v47, 0.0 }
 0x215   :  { %v748_v52 = vmax.f32 %v732_v42, 0.0 }
 0x216   :  { %v756_v61 = vmax.f32 %v740_v11, 0.0 }
 0x217   :  { %v760_v30 = vpack.c.bf16 %v748_v52, %v747_v46 }
 0x218   :  { %v764_v60 = vpack.c.bf16 %v756_v61, %v755_v57 }
 0x219   :  { %853 = vmatmul.bf16.gmra.mxu1 %v760_v30 }
 0x21a   :  { %873 = vmatmul.bf16.gmra.mxu2 %v764_v60 }
 0x22d   :  { %v839_v15 = vpop.f32.mrf.mxu1 }
 0x22e   :  { %v2303_v26 = vadd.f32 %v2300_v6, %v839_v15 }
 0x230   :  { %879 = vadd.xlane.f32.xlu2 %v2303_v26  ;;  %v911_v22 = vmul.f32 %v2303_v26, %v2303_v26 }
 0x232   :  { %927 = vadd.xlane.f32.xlu0 %v911_v22 }
 0x235   :  { %v841_v0 = vpop.f32.mrf.mxu1 }
 0x236   :  { %v2309_v1 = vadd.f32 %v2300_v6, %v841_v0 }
 0x238   :  { %v912_v3 = vmul.f32 %v2309_v1, %v2309_v1 }
 0x23a   :  { %929 = vadd.xlane.f32.xlu1 %v912_v3  ;;  %881 = vadd.xlane.f32.xlu0 %v2309_v1 }
 0x244   :  { %v844_v5 = vpop.f32.mrf.mxu1 }
 0x245   :  { %v2315_v50 = vadd.f32 %v2300_v6, %v844_v5 }
 0x247   :  { %883 = vadd.xlane.f32.xlu1 %v2315_v50  ;;  %v913_v9 = vmul.f32 %v2315_v50, %v2315_v50 }
 0x249   :  { %931 = vadd.xlane.f32.xlu2 %v913_v9 }
 0x24c   :  { %v846_v51 = vpop.f32.mrf.mxu1 }
 0x24d   :  { %v2321_v8 = vadd.f32 %v2300_v6, %v846_v51 }
 0x24f   :  { %v914_v13 = vmul.f32 %v2321_v8, %v2321_v8 }
 0x251   :  { %933 = vadd.xlane.f32.xlu0 %v914_v13  ;;  %885 = vadd.xlane.f32.xlu2 %v2321_v8 }
 0x26d   :  { %v859_v14 = vpop.f32.mrf.mxu2 }
 0x26e   :  { %v2345_v19 = vadd.f32 %v2300_v6, %v859_v14  ;;  %v2398_v14 = vld [vmem:[%s2609_s4 + $0x4] ss:$0 sm:$0xff] }
 0x270   :  { %v919_v49 = vmul.f32 %v2345_v19, %v2345_v19 }
 0x275   :  { %v861_v53 = vpop.f32.mrf.mxu2 }
 0x276   :  { %v2356_v38 = vadd.f32 %v2300_v6, %v861_v53 }
 0x278   :  { %v920_v24 = vmul.f32 %v2356_v38, %v2356_v38 }
 0x27d   :  { %v864_v20 = vpop.f32.mrf.mxu2 }
 0x27e   :  { %v849_v63 = vpop.f32.mrf.mxu1  ;;  %v2366_v12 = vadd.f32 %v2300_v6, %v864_v20 }
 0x27f   :  { %v2327_v28 = vadd.f32 %v2300_v6, %v849_v63 }
 0x280   :  { %v921_v7 = vmul.f32 %v2366_v12, %v2366_v12 }
 0x281   :  { %887 = vadd.xlane.f32.xlu0 %v2327_v28  ;;  %v915_v17 = vmul.f32 %v2327_v28, %v2327_v28 }
 0x283   :  { %935 = vadd.xlane.f32.xlu1 %v915_v17 }
 0x285   :  { %v866_v44 = vpop.f32.mrf.mxu2 }
 0x286   :  { %v851_v36 = vpop.f32.mrf.mxu1  ;;  %v2362_v34 = vadd.f32 %v2300_v6, %v866_v44 }
 0x287   :  { %v2333_v16 = vadd.f32 %v2300_v6, %v851_v36  ;;  %v1720_v36 = vmov 0  }
 0x288   :  { %v922_v58 = vmul.f32 %v2362_v34, %v2362_v34  ;;  %1619 = vset.pattern.permute.xlu2 %v1720_v36  ;;  %1620 = vset.pattern.permute.xlu0 %v1720_v36 }
 0x289   :  { %v916_v18 = vmul.f32 %v2333_v16, %v2333_v16  ;;  %1621 = vset.pattern.permute.xlu1 %v1720_v36 }
 0x28b   :  { %937 = vadd.xlane.f32.xlu2 %v916_v18  ;;  %889 = vadd.xlane.f32.xlu1 %v2333_v16 }
 0x28d   :  { %v869_v37 = vpop.f32.mrf.mxu2 }
 0x28e   :  { %v2374_v10 = vadd.f32 %v2300_v6, %v869_v37 }
 0x290   :  { %v923_v2 = vmul.f32 %v2374_v10, %v2374_v10 }
 0x295   :  { %v871_v45 = vpop.f32.mrf.mxu2 }
 0x296   :  { %v854_v21 = vpop.f32.mrf.mxu1  ;;  %v2386_v52 = vadd.f32 %v2300_v6, %v871_v45 }
 0x297   :  { %v2339_v40 = vadd.f32 %v2300_v6, %v854_v21 }
 0x298   :  { %v924_v51 = vmul.f32 %v2386_v52, %v2386_v52 }
 0x299   :  { %891 = vadd.xlane.f32.xlu2 %v2339_v40  ;;  %v917_v27 = vmul.f32 %v2339_v40, %v2339_v40 }
 0x29b   :  { %939 = vadd.xlane.f32.xlu0 %v917_v27  ;;  %v2410_v27 = vld [vmem:[%s2609_s4 + $0x5] ss:$0 sm:$0xff] }
 0x29d   :  { %v874_v59 = vpop.f32.mrf.mxu2 }
 0x29e   :  { %v856_v23 = vpop.f32.mrf.mxu1  ;;  %v2380_v42 = vadd.f32 %v2300_v6, %v874_v59 }
 0x29f   :  { %v2348_v25 = vadd.f32 %v2300_v6, %v856_v23 }
 0x2a0   :  { %v925_v3 = vmul.f32 %v2380_v42, %v2380_v42 }
 0x2a1   :  { %943 = vadd.xlane.f32.xlu2 %v919_v49  ;;  %v918_v32 = vmul.f32 %v2348_v25, %v2348_v25 }
 0x2a3   :  { %941 = vadd.xlane.f32.xlu1 %v918_v32  ;;  %893 = vadd.xlane.f32.xlu0 %v2348_v25  ;;  %v880_v35 = vpop.xlane.xlu2 %879 }
 0x2a4   :  { %v959_v54 = vmul.f32 0.0078125, %v880_v35 }
 0x2a5   :  { %v928_v39 = vpop.xlane.xlu0 %927  ;;  %v876_v63 = vpop.f32.mrf.mxu2 }
 0x2a6   :  { %v991_v55 = vmul.f32 %v959_v54, %v959_v54  ;;  %v975_v41 = vmul.f32 0.0078125, %v928_v39  ;;  %v1215_v22 = vsub.f32 %v2303_v26, %v959_v54  ;;  %v2404_v18 = vadd.f32 %v2300_v6, %v876_v63 }
 0x2a8   :  { %v1007_v4 = vsub.f32 %v975_v41, %v991_v55  ;;  %v926_v6 = vmul.f32 %v2404_v18, %v2404_v18 }
 0x2a9   :  { %897 = vadd.xlane.f32.xlu2 %v2356_v38 }
 0x2aa   :  { %v1023_v33 = vmax.f32 %v1007_v4, 0.0 }
 0x2ab   :  { %895 = vadd.xlane.f32.xlu1 %v2345_v19  ;;  %945 = vadd.xlane.f32.xlu0 %v920_v24 }
 0x2ac   :  { %v1039_v48 = vadd.f32 1e-05, %v1023_v33  ;;  %v2422_v33 = vld [vmem:[%s2609_s4 + $0x6] ss:$0 sm:$0xff] }
 0x2ad   :  { %v930_v29 = vpop.xlane.xlu1 %929  ;;  %v882_v30 = vpop.xlane.xlu0 %881 }
 0x2ae   :  { %1661 = vrsqrt.f32 %v1039_v48  ;;  %vm1061_vm5 = vweird.f32 %v1039_v48  ;;  %v2401_v26 = vmul.f32 0.0078125, %v882_v30  ;;  %v976_v37 = vmul.f32 0.0078125, %v930_v29 }
 0x2b0   :  { %v992_v23 = vmul.f32 %v2401_v26, %v2401_v26 }
 0x2b1   :  { %949 = vadd.xlane.f32.xlu2 %v922_v58 }
 0x2b2   :  { %v1008_v55 = vsub.f32 %v976_v37, %v992_v23 }
 0x2b3   :  { %947 = vadd.xlane.f32.xlu1 %v921_v7  ;;  %899 = vadd.xlane.f32.xlu0 %v2366_v12 }
 0x2b4   :  { %v1662_v31 = vpop.eup %1661  ;;  %v1024_v58 = vmax.f32 %v1008_v55, 0.0 }
 0x2b5   :  { %v1056_v43 = vmul.f32 %v1662_v31, %v1039_v48  ;;  %vm1062_vm4 = vweird.f32 %v1662_v31 }
 0x2b6   :  { %vm1063_vm6 = vmor %vm1061_vm5, %vm1062_vm4 }
 0x2b7   :  { %v1057_v56 = vmul.f32 %v1662_v31, %v1056_v43  ;;  %v1040_v43 = vadd.f32 1e-05, %v1024_v58 }
 0x2b9   :  { %v1058_v62 = vmul.f32 0.5, %v1057_v56  ;;  %903 = vadd.xlane.f32.xlu2 %v2374_v10  ;;  %vm1071_vm14 = vweird.f32 %v1040_v43 }
 0x2ba   :  { %v884_v47 = vpop.xlane.xlu1 %883 }
 0x2bb   :  { %v1059_v11 = vsub.f32 1.5, %v1058_v62  ;;  %901 = vadd.xlane.f32.xlu1 %v2362_v34  ;;  %951 = vadd.xlane.f32.xlu0 %v923_v2  ;;  %v2383_v46 = vmul.f32 0.0078125, %v884_v47 }
 0x2bc   :  { %v932_v57 = vpop.xlane.xlu2 %931 }
 0x2bd   :  { %v1060_v61 = vmul.f32 %v1662_v31, %v1059_v11  ;;  %v993_v60 = vmul.f32 %v2383_v46, %v2383_v46  ;;  %v977_v15 = vmul.f32 0.0078125, %v932_v57  ;;  %v1217_v59 = vsub.f32 %v2315_v50, %v2383_v46  ;;  %v29_v50 = vld [vmem:[%s2609_s4 + $0x7] sm:$0x1]  ;;  %s1721_s4 = smov [#allocation3]  }
 0x2be   :  { %s1502_s13 = sshll.u32 %s1721_s4, 4  ;;  %s1503_s13 = int_to_ptr.vmem [resolvable:$true] %s1502_s13 }
 0x2bf   :  { %v1009_v0 = vsub.f32 %v977_v15, %v993_v60  ;;  %v1064_v5 = vsel %vm1063_vm6, %v1662_v31, %v1060_v61 }
 0x2c0   :  { %v1231_v13 = vmul.f32 %v1215_v22, %v1064_v5 }
 0x2c1   :  { %v1025_v9 = vmax.f32 %v1009_v0, 0.0  ;;  %955 = vadd.xlane.f32.xlu2 %v925_v3 }
 0x2c2   :  { %v1248_v21 = vmul.f32 %v2398_v14, %v1231_v13 }
 0x2c3   :  { %v1041_v17 = vadd.f32 1e-05, %v1025_v9  ;;  %953 = vadd.xlane.f32.xlu1 %v924_v51  ;;  %905 = vadd.xlane.f32.xlu0 %v2386_v52 }
 0x2c4   :  { %v886_v53 = vpop.xlane.xlu2 %885  ;;  %v934_v20 = vpop.xlane.xlu0 %933  ;;  %v1265_v35 = vadd.f32 %v2410_v27, %v1248_v21 }
 0x2c5   :  { %1663 = vrsqrt.f32 %v1041_v17  ;;  %v962_v44 = vmul.f32 0.0078125, %v886_v53  ;;  %v978_v49 = vmul.f32 0.0078125, %v934_v20  ;;  %vm1081_vm8 = vweird.f32 %v1041_v17 }
 0x2c6   :  { %v1281_v24 = vmax.f32 %v1265_v35, 0.0 }
 0x2c7   :  { %v994_v32 = vmul.f32 %v962_v44, %v962_v44  ;;  %v1218_v5 = vsub.f32 %v2321_v8, %v962_v44  ;;  %v1216_v44 = vsub.f32 %v2309_v1, %v2401_v26 }
 0x2c8   :  { %v1298_v29 = vmul.f32 %v2422_v33, %v1281_v24 }
 0x2c9   :  { %909 = vadd.xlane.f32.xlu2 %v2404_v18  ;;  %v1010_v54 = vsub.f32 %v978_v49, %v994_v32 }
 0x2cb   :  { %v1664_v39 = vpop.eup %1663  ;;  %957 = vadd.xlane.f32.xlu0 %v926_v6  ;;  %907 = vadd.xlane.f32.xlu1 %v2380_v42  ;;  %v1026_v4 = vmax.f32 %v1010_v54, 0.0 }
 0x2cc   :  { %v1076_v41 = vmul.f32 %v1664_v39, %v1041_v17  ;;  %vm1082_vm7 = vweird.f32 %v1664_v39 }
 0x2cd   :  { %v1042_v45 = vadd.f32 1e-05, %v1026_v4  ;;  %vm1083_vm9 = vmor %vm1081_vm8, %vm1082_vm7 }
 0x2ce   :  { %v1077_v48 = vmul.f32 %v1664_v39, %v1076_v41 }
 0x2cf   :  { %1665 = vrsqrt.f32 %v1042_v45  ;;  %vm1091_vm11 = vweird.f32 %v1042_v45 }
 0x2d0   :  { %v1078_v7 = vmul.f32 0.5, %v1077_v48  ;;  %1667 = vrsqrt.f32 %v1040_v43 }
 0x2d2   :  { %v1079_v31 = vsub.f32 1.5, %v1078_v7 }
 0x2d3   :  { %1314 = vadd.xlane.f32.xlu1 %v1298_v29 }
 0x2d4   :  { %v1080_v56 = vmul.f32 %v1664_v39, %v1079_v31 }
 0x2d5   :  { %v1666_v62 = vpop.eup %1665 }
 0x2d6   :  { %v1084_v2 = vsel %vm1083_vm9, %v1664_v39, %v1080_v56  ;;  %v1086_v47 = vmul.f32 %v1666_v62, %v1042_v45  ;;  %vm1092_vm10 = vweird.f32 %v1666_v62  ;;  %v1668_v0 = vpop.eup %1667 }
 0x2d7   :  { %v1233_v11 = vmul.f32 %v1217_v59, %v1084_v2  ;;  %vm1093_vm12 = vmor %vm1091_vm11, %vm1092_vm10  ;;  %v1066_v9 = vmul.f32 %v1668_v0, %v1040_v43  ;;  %vm1072_vm13 = vweird.f32 %v1668_v0 }
 0x2d8   :  { %v1087_v57 = vmul.f32 %v1666_v62, %v1086_v47  ;;  %vm1073_vm15 = vmor %vm1071_vm14, %vm1072_vm13 }
 0x2d9   :  { %v1250_v61 = vmul.f32 %v2398_v14, %v1233_v11  ;;  %v1067_v17 = vmul.f32 %v1668_v0, %v1066_v9 }
 0x2da   :  { %v1088_v30 = vmul.f32 0.5, %v1087_v57 }
 0x2db   :  { %v1267_v60 = vadd.f32 %v2410_v27, %v1250_v61  ;;  %v1068_v20 = vmul.f32 0.5, %v1067_v17 }
 0x2dc   :  { %v1089_v15 = vsub.f32 1.5, %v1088_v30 }
 0x2dd   :  { %v1283_v22 = vmax.f32 %v1267_v60, 0.0  ;;  %v1069_v23 = vsub.f32 1.5, %v1068_v20 }
 0x2de   :  { %v1090_v46 = vmul.f32 %v1666_v62, %v1089_v15 }
 0x2df   :  { %v1300_v3 = vmul.f32 %v2422_v33, %v1283_v22  ;;  %v1070_v49 = vmul.f32 %v1668_v0, %v1069_v23 }
 0x2e0   :  { %v1094_v51 = vsel %vm1093_vm12, %v1666_v62, %v1090_v46 }
 0x2e1   :  { %1348 = vperm.xlu2 %1619, %v29_v50   ;;  %1318 = vadd.xlane.f32.xlu0 %v1300_v3  ;;  %v1234_v13 = vmul.f32 %v1218_v5, %v1094_v51  ;;  %v1074_v8 = vsel %vm1073_vm15, %v1668_v0, %v1070_v49 }
 0x2e2   :  { %v1232_v37 = vmul.f32 %v1216_v44, %v1074_v8 }
 0x2e3   :  { %v1251_v63 = vmul.f32 %v2398_v14, %v1234_v13 }
 0x2e4   :  { %v1249_v41 = vmul.f32 %v2398_v14, %v1232_v37 }
 0x2e5   :  { %v1268_v53 = vadd.f32 %v2410_v27, %v1251_v63 }
 0x2e6   :  { %v1266_v58 = vadd.f32 %v2410_v27, %v1249_v41 }
 0x2e7   :  { %v1284_v36 = vmax.f32 %v1268_v53, 0.0 }
 0x2e8   :  { %v1282_v1 = vmax.f32 %v1266_v58, 0.0 }
 0x2e9   :  { %v1301_v21 = vmul.f32 %v2422_v33, %v1284_v36 }
 0x2ea   :  { %v1299_v62 = vmul.f32 %v2422_v33, %v1282_v1 }
 0x2eb   :  { %1320 = vadd.xlane.f32.xlu1 %v1301_v21 }
 0x2f4   :  { %v888_v32 = vpop.xlane.xlu0 %887 }
 0x2f5   :  { %v963_v6 = vmul.f32 0.0078125, %v888_v32 }
 0x2f6   :  { %v936_v35 = vpop.xlane.xlu1 %935 }
 0x2f7   :  { %v995_v54 = vmul.f32 %v963_v6, %v963_v6  ;;  %v979_v39 = vmul.f32 0.0078125, %v936_v35  ;;  %v1219_v46 = vsub.f32 %v2327_v28, %v963_v6 }
 0x2f9   :  { %v1011_v55 = vsub.f32 %v979_v39, %v995_v54 }
 0x2fb   :  { %v1027_v4 = vmax.f32 %v1011_v55, 0.0 }
 0x2fd   :  { %v1043_v24 = vadd.f32 1e-05, %v1027_v4 }
 0x2fe   :  { %v938_v48 = vpop.xlane.xlu2 %937  ;;  %v890_v45 = vpop.xlane.xlu1 %889 }
 0x2ff   :  { %1669 = vrsqrt.f32 %v1043_v24  ;;  %v964_v7 = vmul.f32 0.0078125, %v890_v45  ;;  %v980_v29 = vmul.f32 0.0078125, %v938_v48  ;;  %vm1101_vm1 = vweird.f32 %v1043_v24 }
 0x301   :  { %v996_v31 = vmul.f32 %v964_v7, %v964_v7  ;;  %v1220_v37 = vsub.f32 %v2333_v16, %v964_v7 }
 0x303   :  { %v1012_v26 = vsub.f32 %v980_v29, %v996_v31 }
 0x305   :  { %v1670_v43 = vpop.eup %1669  ;;  %v1028_v56 = vmax.f32 %v1012_v26, 0.0 }
 0x306   :  { %v1096_v59 = vmul.f32 %v1670_v43, %v1043_v24  ;;  %vm1102_vm0 = vweird.f32 %v1670_v43 }
 0x307   :  { %v1044_v2 = vadd.f32 1e-05, %v1028_v56  ;;  %vm1103_vm2 = vmor %vm1101_vm1, %vm1102_vm0 }
 0x308   :  { %v1097_v47 = vmul.f32 %v1670_v43, %v1096_v59 }
 0x309   :  { %1671 = vrsqrt.f32 %v1044_v2  ;;  %vm1111_vm4 = vweird.f32 %v1044_v2 }
 0x30a   :  { %1316 = vadd.xlane.f32.xlu2 %v1299_v62  ;;  %v1098_v11 = vmul.f32 0.5, %v1097_v47 }
 0x30c   :  { %v892_v57 = vpop.xlane.xlu2 %891  ;;  %v1099_v30 = vsub.f32 1.5, %v1098_v11 }
 0x30d   :  { %v2442_v61 = vmul.f32 0.0078125, %v892_v57 }
 0x30e   :  { %v940_v60 = vpop.xlane.xlu0 %939  ;;  %v1100_v0 = vmul.f32 %v1670_v43, %v1099_v30 }
 0x30f   :  { %v997_v15 = vmul.f32 %v2442_v61, %v2442_v61  ;;  %v981_v22 = vmul.f32 0.0078125, %v940_v60  ;;  %v1672_v50 = vpop.eup %1671 }
 0x310   :  { %v1106_v5 = vmul.f32 %v1672_v50, %v1044_v2  ;;  %v1104_v9 = vsel %vm1103_vm2, %v1670_v43, %v1100_v0  ;;  %vm1112_vm3 = vweird.f32 %v1672_v50 }
 0x311   :  { %v1013_v3 = vsub.f32 %v981_v22, %v997_v15  ;;  %v1235_v13 = vmul.f32 %v1219_v46, %v1104_v9  ;;  %vm1113_vm5 = vmor %vm1111_vm4, %vm1112_vm3 }
 0x312   :  { %v1107_v63 = vmul.f32 %v1672_v50, %v1106_v5 }
 0x313   :  { %v1029_v51 = vmax.f32 %v1013_v3, 0.0  ;;  %v1252_v36 = vmul.f32 %v2398_v14, %v1235_v13  ;;  %v1221_v13 = vsub.f32 %v2339_v40, %v2442_v61 }
 0x314   :  { %v944_v17 = vpop.xlane.xlu2 %943  ;;  %v1108_v20 = vmul.f32 0.5, %v1107_v63 }
 0x315   :  { %v1045_v53 = vadd.f32 1e-05, %v1029_v51  ;;  %v1269_v28 = vadd.f32 %v2410_v27, %v1252_v36  ;;  %v983_v2 = vmul.f32 0.0078125, %v944_v17 }
 0x316   :  { %v894_v21 = vpop.xlane.xlu0 %893  ;;  %v942_v23 = vpop.xlane.xlu1 %941  ;;  %v1109_v8 = vsub.f32 1.5, %v1108_v20 }
 0x317   :  { %1673 = vrsqrt.f32 %v1045_v53  ;;  %v2448_v49 = vmul.f32 0.0078125, %v894_v21  ;;  %v982_v32 = vmul.f32 0.0078125, %v942_v23  ;;  %v1285_v35 = vmax.f32 %v1269_v28, 0.0 }
 0x318   :  { %v1110_v6 = vmul.f32 %v1672_v50, %v1109_v8  ;;  %vm1121_vm7 = vweird.f32 %v1045_v53 }
 0x319   :  { %v998_v44 = vmul.f32 %v2448_v49, %v2448_v49  ;;  %v1302_v55 = vmul.f32 %v2422_v33, %v1285_v35 }
 0x31a   :  { %v1114_v39 = vsel %vm1113_vm5, %v1672_v50, %v1110_v6 }
 0x31b   :  { %v1014_v54 = vsub.f32 %v982_v32, %v998_v44  ;;  %v1236_v24 = vmul.f32 %v1220_v37, %v1114_v39  ;;  %1322 = vadd.xlane.f32.xlu2 %v1302_v55 }
 0x31c   :  { %v898_v41 = vpop.xlane.xlu2 %897 }
 0x31d   :  { %v1674_v4 = vpop.eup %1673  ;;  %v1030_v48 = vmax.f32 %v1014_v54, 0.0  ;;  %v2455_v45 = vmul.f32 0.0078125, %v898_v41  ;;  %v1253_v56 = vmul.f32 %v2398_v14, %v1236_v24 }
 0x31e   :  { %v1116_v58 = vmul.f32 %v1674_v4, %v1045_v53  ;;  %v946_v29 = vpop.xlane.xlu0 %945  ;;  %v896_v31 = vpop.xlane.xlu1 %895  ;;  %vm1122_vm6 = vweird.f32 %v1674_v4 }
 0x31f   :  { %v2457_v1 = vadd.f32 1e-05, %v1030_v48  ;;  %v1000_v26 = vmul.f32 %v2455_v45, %v2455_v45  ;;  %v984_v16 = vmul.f32 0.0078125, %v946_v29  ;;  %v2461_v43 = vmul.f32 0.0078125, %v896_v31  ;;  %vm1123_vm8 = vmor %vm1121_vm7, %vm1122_vm6 }
 0x320   :  { %v1117_v7 = vmul.f32 %v1674_v4, %v1116_v58  ;;  %v1270_v11 = vadd.f32 %v2410_v27, %v1253_v56 }
 0x321   :  { %1675 = vrsqrt.f32 %v2457_v1  ;;  %v1016_v59 = vsub.f32 %v984_v16, %v1000_v26  ;;  %v999_v47 = vmul.f32 %v2461_v43, %v2461_v43  ;;  %vm1131_vm10 = vweird.f32 %v2457_v1 }
 0x322   :  { %v1118_v62 = vmul.f32 0.5, %v1117_v7  ;;  %v1286_v22 = vmax.f32 %v1270_v11, 0.0  ;;  %v1222_v7 = vsub.f32 %v2348_v25, %v2448_v49 }
 0x323   :  { %v1032_v57 = vmax.f32 %v1016_v59, 0.0  ;;  %v1015_v60 = vsub.f32 %v983_v2, %v999_v47 }
 0x324   :  { %v1119_v30 = vsub.f32 1.5, %v1118_v62  ;;  %v950_v15 = vpop.xlane.xlu2 %949  ;;  %v1303_v3 = vmul.f32 %v2422_v33, %v1286_v22 }
 0x325   :  { %v2468_v0 = vadd.f32 1e-05, %v1032_v57  ;;  %v1031_v46 = vmax.f32 %v1015_v60, 0.0  ;;  %v986_v62 = vmul.f32 0.0078125, %v950_v15 }
 0x326   :  { %v1120_v50 = vmul.f32 %v1674_v4, %v1119_v30  ;;  %v900_v5 = vpop.xlane.xlu0 %899  ;;  %v948_v9 = vpop.xlane.xlu1 %947  ;;  %1324 = vadd.xlane.f32.xlu0 %v1303_v3 }
 0x327   :  { %v1676_v51 = vpop.eup %1675  ;;  %1677 = vrsqrt.f32 %v2468_v0  ;;  %v2474_v63 = vmul.f32 0.0078125, %v900_v5  ;;  %v2477_v36 = vadd.f32 1e-05, %v1031_v46  ;;  %v985_v21 = vmul.f32 0.0078125, %v948_v9 }
 0x328   :  { %v1126_v17 = vmul.f32 %v1676_v51, %v2457_v1  ;;  %v1124_v53 = vsel %vm1123_vm8, %v1674_v4, %v1120_v50  ;;  %vm1132_vm9 = vweird.f32 %v1676_v51  ;;  %vm1151_vm14 = vweird.f32 %v2468_v0 }
 0x329   :  { %v1001_v20 = vmul.f32 %v2474_v63, %v2474_v63  ;;  %v1237_v23 = vmul.f32 %v1221_v13, %v1124_v53  ;;  %1679 = vrsqrt.f32 %v2477_v36  ;;  %vm1133_vm11 = vmor %vm1131_vm10, %vm1132_vm9  ;;  %vm1141_vm15 = vweird.f32 %v2477_v36 }
 0x32a   :  { %v1127_v8 = vmul.f32 %v1676_v51, %v1126_v17 }
 0x32b   :  { %v1017_v40 = vsub.f32 %v985_v21, %v1001_v20  ;;  %v1254_v61 = vmul.f32 %v2398_v14, %v1237_v23 }
 0x32c   :  { %v1128_v28 = vmul.f32 0.5, %v1127_v8  ;;  %v904_v44 = vpop.xlane.xlu2 %903 }
 0x32d   :  { %v2483_v32 = vpop.eup %1677  ;;  %v1033_v6 = vmax.f32 %v1017_v40, 0.0  ;;  %v2485_v35 = vmul.f32 0.0078125, %v904_v44  ;;  %v1271_v37 = vadd.f32 %v2410_v27, %v1254_v61 }
 0x32e   :  { %v1129_v54 = vsub.f32 1.5, %v1128_v28  ;;  %v1146_v39 = vmul.f32 %v2483_v32, %v2468_v0  ;;  %v952_v55 = vpop.xlane.xlu0 %951  ;;  %v902_v41 = vpop.xlane.xlu1 %901  ;;  %vm1152_vm12 = vweird.f32 %v2483_v32 }
 0x32f   :  { %v2490_v4 = vadd.f32 1e-05, %v1033_v6  ;;  %v1003_v24 = vmul.f32 %v2485_v35, %v2485_v35  ;;  %v987_v48 = vmul.f32 0.0078125, %v952_v55  ;;  %v1680_v58 = vpop.eup %1679  ;;  %v2495_v26 = vmul.f32 0.0078125, %v902_v41  ;;  %vm2523_vm0 = vmor %vm1151_vm14, %vm1152_vm12 }
 0x330   :  { %v1130_v29 = vmul.f32 %v1676_v51, %v1129_v54  ;;  %v1147_v31 = vmul.f32 %v2483_v32, %v1146_v39  ;;  %v1287_v16 = vmax.f32 %v1271_v37, 0.0  ;;  %v1136_v56 = vmul.f32 %v1680_v58, %v2477_v36 }
 0x331   :  { %1681 = vrsqrt.f32 %v2490_v4  ;;  %v1019_v2 = vsub.f32 %v987_v48, %v1003_v24  ;;  %v1002_v47 = vmul.f32 %v2495_v26, %v2495_v26  ;;  %vm1142_vm13 = vweird.f32 %v1680_v58 }
 0x332   :  { %v1148_v59 = vmul.f32 0.5, %v1147_v31  ;;  %v1137_v11 = vmul.f32 %v1680_v58, %v1136_v56  ;;  %v1304_v57 = vmul.f32 %v2422_v33, %v1287_v16  ;;  %v1134_v30 = vsel %vm1133_vm11, %v1676_v51, %v1130_v29  ;;  %vm1143_vm1 = vmor %vm1141_vm15, %vm1142_vm13 }
 0x333   :  { %v1035_v22 = vmax.f32 %v1019_v2, 0.0  ;;  %v1018_v25 = vsub.f32 %v986_v62, %v1002_v47  ;;  %v1238_v1 = vmul.f32 %v1222_v7, %v1134_v30  ;;  %v1224_v51 = vsub.f32 %v2356_v38, %v2455_v45 }
 0x334   :  { %v1149_v60 = vsub.f32 1.5, %v1148_v59  ;;  %v956_v49 = vpop.xlane.xlu2 %955  ;;  %v1138_v50 = vmul.f32 0.5, %v1137_v11  ;;  %1326 = vadd.xlane.f32.xlu1 %v1304_v57  ;;  %v1223_v36 = vsub.f32 %v2345_v19, %v2461_v43  ;;  %vm1161_vm3 = vweird.f32 %v2490_v4 }
 0x335   :  { %v2507_v15 = vadd.f32 1e-05, %v1035_v22  ;;  %v1034_v3 = vmax.f32 %v1018_v25, 0.0  ;;  %v1255_v13 = vmul.f32 %v2398_v14, %v1238_v1  ;;  %v989_v22 = vmul.f32 0.0078125, %v956_v49 }
 0x336   :  { %v1150_v46 = vmul.f32 %v2483_v32, %v1149_v60  ;;  %v906_v5 = vpop.xlane.xlu0 %905  ;;  %v954_v9 = vpop.xlane.xlu1 %953  ;;  %v1139_v53 = vsub.f32 1.5, %v1138_v50  ;;  %v1225_v50 = vsub.f32 %v2366_v12, %v2474_v63 }
 0x337   :  { %v2510_v17 = vpop.eup %1681  ;;  %v2514_v20 = vmul.f32 0.0078125, %v906_v5  ;;  %1683 = vrsqrt.f32 %v2507_v15  ;;  %v2527_v45 = vadd.f32 1e-05, %v1034_v3  ;;  %v988_v0 = vmul.f32 0.0078125, %v954_v9 }
 0x338   :  { %v1156_v21 = vmul.f32 %v2510_v17, %v2490_v4  ;;  %v1140_v38 = vmul.f32 %v1680_v58, %v1139_v53  ;;  %v1272_v61 = vadd.f32 %v2410_v27, %v1255_v13  ;;  %v1154_v28 = vsel %vm2523_vm0, %v2483_v32, %v1150_v46 }
 0x339   :  { %v1004_v8 = vmul.f32 %v2514_v20, %v2514_v20  ;;  %1685 = vrsqrt.f32 %v2527_v45  ;;  %v1240_v41 = vmul.f32 %v1224_v51, %v1154_v28  ;;  %vm1162_vm2 = vweird.f32 %v2510_v17 }
 0x33a   :  { %v1157_v40 = vmul.f32 %v2510_v17, %v1156_v21  ;;  %v1144_v44 = vsel %vm1143_vm1, %v1680_v58, %v1140_v38  ;;  %v1288_v55 = vmax.f32 %v1272_v61, 0.0  ;;  %vm1163_vm4 = vmor %vm1161_vm3, %vm1162_vm2  ;;  %vm1181_vm6 = vweird.f32 %v2507_v15 }
 0x33b   :  { %v1020_v6 = vsub.f32 %v988_v0, %v1004_v8  ;;  %v1239_v37 = vmul.f32 %v1223_v36, %v1144_v44  ;;  %v1257_v32 = vmul.f32 %v2398_v14, %v1240_v41  ;;  %v1227_v0 = vsub.f32 %v2374_v10, %v2485_v35 }
 0x33c   :  { %v1158_v54 = vmul.f32 0.5, %v1157_v40  ;;  %v910_v39 = vpop.xlane.xlu2 %909  ;;  %v1305_v29 = vmul.f32 %v2422_v33, %v1288_v55  ;;  %vm1171_vm9 = vweird.f32 %v2527_v45 }
 0x33d   :  { %v1036_v24 = vmax.f32 %v1020_v6, 0.0  ;;  %v2539_v48 = vmul.f32 0.0078125, %v910_v39  ;;  %v1684_v19 = vpop.eup %1683  ;;  %v1256_v59 = vmul.f32 %v2398_v14, %v1239_v37  ;;  %v1274_v30 = vadd.f32 %v2410_v27, %v1257_v32 }
 0x33e   :  { %v1159_v43 = vsub.f32 1.5, %v1158_v54  ;;  %v958_v31 = vpop.xlane.xlu0 %957  ;;  %v908_v16 = vpop.xlane.xlu1 %907  ;;  %v1176_v58 = vmul.f32 %v1684_v19, %v2507_v15  ;;  %1328 = vadd.xlane.f32.xlu2 %v1305_v29  ;;  %vm1182_vm5 = vweird.f32 %v1684_v19  ;;  %v1226_v15 = vsub.f32 %v2362_v34, %v2495_v26 }
 0x33f   :  { %v2544_v7 = vadd.f32 1e-05, %v1036_v24  ;;  %v1006_v56 = vmul.f32 %v2539_v48, %v2539_v48  ;;  %v990_v2 = vmul.f32 0.0078125, %v958_v31  ;;  %v2551_v47 = vmul.f32 0.0078125, %v908_v16  ;;  %v1686_v11 = vpop.eup %1685  ;;  %vm1183_vm7 = vmor %vm1181_vm6, %vm1182_vm5 }
 0x340   :  { %v1160_v62 = vmul.f32 %v2510_v17, %v1159_v43  ;;  %v1177_v57 = vmul.f32 %v1684_v19, %v1176_v58  ;;  %v1166_v60 = vmul.f32 %v1686_v11, %v2527_v45  ;;  %v1290_v3 = vmax.f32 %v1274_v30, 0.0 }
 0x341   :  { %1687 = vrsqrt.f32 %v2544_v7  ;;  %v1022_v25 = vsub.f32 %v990_v2, %v1006_v56  ;;  %v1005_v1 = vmul.f32 %v2551_v47, %v2551_v47  ;;  %v1273_v4 = vadd.f32 %v2410_v27, %v1256_v59 }
 0x342   :  { %v1178_v46 = vmul.f32 0.5, %v1177_v57  ;;  %v1167_v5 = vmul.f32 %v1686_v11, %v1166_v60  ;;  %v1164_v51 = vsel %vm1163_vm4, %v2510_v17, %v1160_v62  ;;  %v1307_v49 = vmul.f32 %v2422_v33, %v1290_v3 }
 0x343   :  { %v1038_v9 = vmax.f32 %v1022_v25, 0.0  ;;  %v1021_v13 = vsub.f32 %v989_v22, %v1005_v1  ;;  %v1289_v21 = vmax.f32 %v1273_v4, 0.0  ;;  %v1241_v12 = vmul.f32 %v1225_v50, %v1164_v51 }
 0x344   :  { %v1179_v53 = vsub.f32 1.5, %v1178_v46  ;;  %v1168_v23 = vmul.f32 0.5, %v1167_v5  ;;  %1332 = vadd.xlane.f32.xlu1 %v1307_v49  ;;  %vm1172_vm8 = vweird.f32 %v1686_v11  ;;  %vm1191_vm12 = vweird.f32 %v2544_v7 }
 0x345   :  { %v2564_v38 = vadd.f32 1e-05, %v1038_v9  ;;  %v1037_v8 = vmax.f32 %v1021_v13, 0.0  ;;  %v1306_v17 = vmul.f32 %v2422_v33, %v1289_v21  ;;  %v1258_v44 = vmul.f32 %v2398_v14, %v1241_v12  ;;  %vm1173_vm10 = vmor %vm1171_vm9, %vm1172_vm8 }
 0x346   :  { %v1180_v36 = vmul.f32 %v1684_v19, %v1179_v53  ;;  %v1169_v40 = vsub.f32 1.5, %v1168_v23  ;;  %v1228_v56 = vsub.f32 %v2386_v52, %v2514_v20  ;;  %v1230_v3 = vsub.f32 %v2404_v18, %v2539_v48 }
 0x347   :  { %v1688_v63 = vpop.eup %1687  ;;  %1689 = vrsqrt.f32 %v2564_v38  ;;  %v1053_v28 = vadd.f32 1e-05, %v1037_v8  ;;  %1330 = vadd.xlane.f32.xlu0 %v1306_v17  ;;  %v1275_v54 = vadd.f32 %v2410_v27, %v1258_v44  ;;  %vm1211_vm15 = vweird.f32 %v2564_v38 }
 0x348   :  { %v1186_v61 = vmul.f32 %v1688_v63, %v2544_v7  ;;  %v1184_v6 = vsel %vm1183_vm7, %v1684_v19, %v1180_v36  ;;  %v1170_v37 = vmul.f32 %v1686_v11, %v1169_v40  ;;  %vm1192_vm11 = vweird.f32 %v1688_v63 }
 0x349   :  { %v1243_v35 = vmul.f32 %v1227_v0, %v1184_v6  ;;  %1691 = vrsqrt.f32 %v1053_v28  ;;  %v1291_v43 = vmax.f32 %v1275_v54, 0.0  ;;  %vm1193_vm13 = vmor %vm1191_vm12, %vm1192_vm11  ;;  %vm1201_vm2 = vweird.f32 %v1053_v28 }
 0x34a   :  { %v1187_v10 = vmul.f32 %v1688_v63, %v1186_v61  ;;  %v1174_v39 = vsel %vm1173_vm10, %v1686_v11, %v1170_v37  ;;  %v1229_v53 = vsub.f32 %v2380_v42, %v2551_v47  ;;  %v1349_v47 = vpop.permute.xlu2 %1348  ;;  %v1315_v61 = vpop.xlane.xlu1 %1314  ;;  %vm1437_vm4 = vcmask 130112  }
 0x34b   :  { %v1260_v41 = vmul.f32 %v2398_v14, %v1243_v35  ;;  %v1242_v24 = vmul.f32 %v1226_v15, %v1174_v39  ;;  %v1308_v16 = vmul.f32 %v2422_v33, %v1291_v43  ;;  %v1350_v17 = vperm.slane %v1349_v47, 0 }
 0x34c   :  { %v1188_v55 = vmul.f32 0.5, %v1187_v10  ;;  %vm1441_vm5 = vcmask 195712   ;;  %vm1445_vm6 = vcmask 261312   ;;  %vm1449_vm7 = vcmask 326912  }
 0x34d   :  { %v1690_v29 = vpop.eup %1689  ;;  %v1277_v45 = vadd.f32 %v2410_v27, %v1260_v41  ;;  %v1259_v34 = vmul.f32 %v2398_v14, %v1242_v24  ;;  %1334 = vadd.xlane.f32.xlu2 %v1308_v16  ;;  %vm1453_vm8 = vcmask 392512   ;;  %vm1457_vm9 = vcmask 458112  }
 0x34e   :  { %v1189_v19 = vsub.f32 1.5, %v1188_v55  ;;  %v1206_v31 = vmul.f32 %v1690_v29, %v2564_v38  ;;  %vm1212_vm14 = vweird.f32 %v1690_v29  ;;  %vm1461_vm10 = vcmask 523712  }
 0x34f   :  { %v1293_v32 = vmax.f32 %v1277_v45, 0.0  ;;  %v1692_v58 = vpop.eup %1691  ;;  %v1276_v62 = vadd.f32 %v2410_v27, %v1259_v34  ;;  %vm1213_vm0 = vmor %vm1211_vm15, %vm1212_vm14  ;;  %vm1465_vm11 = vcmask 589312   ;;  %vm1469_vm12 = vcmask 654912  }
 0x350   :  { %v1190_v26 = vmul.f32 %v1688_v63, %v1189_v19  ;;  %v1207_v59 = vmul.f32 %v1690_v29, %v1206_v31  ;;  %v1196_v2 = vmul.f32 %v1692_v58, %v1053_v28  ;;  %vm1202_vm1 = vweird.f32 %v1692_v58 }
 0x351   :  { %v1310_v11 = vmul.f32 %v2422_v33, %v1293_v32  ;;  %v1292_v60 = vmax.f32 %v1276_v62, 0.0  ;;  %vm1203_vm3 = vmor %vm1201_vm2, %vm1202_vm1  ;;  %v1352_v28 = vadd.f32 %v1350_v17, %v1315_v61  ;;  %vm1477_vm14 = vcmask 786112  }
 0x352   :  { %v1194_v57 = vsel %vm1193_vm13, %v1688_v63, %v1190_v26  ;;  %v1208_v30 = vmul.f32 0.5, %v1207_v59  ;;  %v1197_v25 = vmul.f32 %v1692_v58, %v1196_v2  ;;  %vm1473_vm13 = vcmask 720512  }
 0x353   :  { %v1244_v22 = vmul.f32 %v1228_v56, %v1194_v57  ;;  %1338 = vadd.xlane.f32.xlu1 %v1310_v11  ;;  %v1309_v1 = vmul.f32 %v2422_v33, %v1292_v60  ;;  %vm1481_vm15 = vcmask 851712   ;;  %vm1489_vm1 = vcmask 982912  }
 0x354   :  { %v1209_v7 = vsub.f32 1.5, %v1208_v30  ;;  %v1198_v20 = vmul.f32 0.5, %v1197_v25  ;;  %v1319_v36 = vpop.xlane.xlu0 %1318  ;;  %v1432_v30 = vlaneseq  ;;  %vm1493_vm2 = vcmask 1048512  }
 0x355   :  { %v1261_v52 = vmul.f32 %v2398_v14, %v1244_v22  ;;  %1336 = vadd.xlane.f32.xlu0 %v1309_v1  ;;  %v1354_v40 = vadd.f32 %v1350_v17, %v1319_v36 }
 0x356   :  { %v1210_v50 = vmul.f32 %v1690_v29, %v1209_v7  ;;  %v1199_v4 = vsub.f32 1.5, %v1198_v20  ;;  %v1433_v25 = vand.u32 127, %v1432_v30 }
 0x357   :  { %v1278_v46 = vadd.f32 %v2410_v27, %v1261_v52 }
 0x358   :  { %v1214_v9 = vsel %vm1213_vm0, %v1690_v29, %v1210_v50  ;;  %v1200_v13 = vmul.f32 %v1692_v58, %v1199_v4  ;;  %v1435_v1 = vadd.s32 4294967288, %v1433_v25  ;;  %vm1485_vm0 = vcmask 917312  }
 0x359   :  { %v1294_v5 = vmax.f32 %v1278_v46, 0.0  ;;  %v1246_v51 = vmul.f32 %v1230_v3, %v1214_v9  ;;  %v1443_v46 = vadd.s32 4294967272, %v1433_v25  ;;  %v1439_v3 = vadd.s32 4294967280, %v1433_v25 }
 0x35a   :  { %v1204_v21 = vsel %vm1203_vm3, %v1692_v58, %v1200_v13 }
 0x35b   :  { %v1311_v49 = vmul.f32 %v2422_v33, %v1294_v5  ;;  %v1263_v23 = vmul.f32 %v2398_v14, %v1246_v51  ;;  %v1245_v38 = vmul.f32 %v1229_v53, %v1204_v21  ;;  %v1451_v51 = vadd.s32 4294967256, %v1433_v25 }
 0x35d   :  { %1340 = vadd.xlane.f32.xlu2 %v1311_v49  ;;  %v1280_v18 = vadd.f32 %v2410_v27, %v1263_v23  ;;  %v1262_v48 = vmul.f32 %v2398_v14, %v1245_v38  ;;  %v1447_v49 = vadd.s32 4294967264, %v1433_v25 }
 0x35e   :  { %v1321_v6 = vpop.xlane.xlu1 %1320 }
 0x35f   :  { %v1296_v8 = vmax.f32 %v1280_v18, 0.0  ;;  %v1279_v12 = vadd.f32 %v2410_v27, %v1262_v48  ;;  %v1355_v27 = vadd.f32 %v1350_v17, %v1321_v6 }
 0x361   :  { %v1313_v63 = vmul.f32 %v2422_v33, %v1296_v8  ;;  %v1295_v0 = vmax.f32 %v1279_v12, 0.0  ;;  %v1459_v8 = vadd.s32 4294967240, %v1433_v25 }
 0x363   :  { %1344 = vadd.xlane.f32.xlu1 %v1313_v63  ;;  %v1312_v42 = vmul.f32 %v2422_v33, %v1295_v0  ;;  %v1455_v63 = vadd.s32 4294967248, %v1433_v25  ;;  %v1463_v0 = vadd.s32 4294967232, %v1433_v25 }
 0x365   :  { %1342 = vadd.xlane.f32.xlu0 %v1312_v42 }
 0x375   :  { %1391 = vperm.xlu2 %1619, %v1354_v40  }
 0x379   :  { %1385 = vperm.xlu0 %1620, %v1352_v28   ;;  %v1471_v28 = vadd.s32 4294967216, %v1433_v25 }
 0x37d   :  { %v1317_v44 = vpop.xlane.xlu2 %1316 }
 0x37e   :  { %v1353_v14 = vadd.f32 %v1350_v17, %v1317_v44  ;;  %v1467_v44 = vadd.s32 4294967224, %v1433_v25 }
 0x380   :  { %1388 = vperm.xlu1 %1621, %v1353_v14   ;;  %v1475_v14 = vadd.s32 4294967208, %v1433_v25 }
 0x388   :  { %1394 = vperm.xlu1 %1621, %v1355_v27  }
 0x38e   :  { %v1323_v37 = vpop.xlane.xlu2 %1322 }
 0x38f   :  { %v1356_v10 = vadd.f32 %v1350_v17, %v1323_v37 }
 0x391   :  { %1397 = vperm.xlu2 %1619, %v1356_v10  }
 0x399   :  { %v1325_v35 = vpop.xlane.xlu0 %1324 }
 0x39a   :  { %v1357_v33 = vadd.f32 %v1350_v17, %v1325_v35 }
 0x39c   :  { %1400 = vperm.xlu1 %1621, %v1357_v33  }
 0x3a7   :  { %v1327_v15 = vpop.xlane.xlu1 %1326 }
 0x3a8   :  { %v1358_v54 = vadd.f32 %v1350_v17, %v1327_v15 }
 0x3aa   :  { %1403 = vperm.xlu2 %1619, %v1358_v54  }
 0x3b1   :  { %v1329_v39 = vpop.xlane.xlu2 %1328 }
 0x3b2   :  { %v1359_v55 = vadd.f32 %v1350_v17, %v1329_v39  ;;  %v1483_v39 = vadd.s32 4294967192, %v1433_v25 }
 0x3b4   :  { %1406 = vperm.xlu0 %1620, %v1359_v55   ;;  %v1479_v55 = vadd.s32 4294967200, %v1433_v25 }
 0x3b7   :  { %v1333_v41 = vpop.xlane.xlu1 %1332 }
 0x3b8   :  { %v1361_v24 = vadd.f32 %v1350_v17, %v1333_v41 }
 0x3ba   :  { %v1331_v43 = vpop.xlane.xlu0 %1330  ;;  %1412 = vperm.xlu2 %1619, %v1361_v24  }
 0x3bb   :  { %v1360_v29 = vadd.f32 %v1350_v17, %v1331_v43 }
 0x3bd   :  { %1409 = vperm.xlu1 %1621, %v1360_v29   ;;  %v1487_v29 = vadd.s32 4294967184, %v1433_v25 }
 0x3c0   :  { %v1335_v19 = vpop.xlane.xlu2 %1334 }
 0x3c1   :  { %v1362_v45 = vadd.f32 %v1350_v17, %v1335_v19  ;;  %v1491_v19 = vadd.s32 4294967176, %v1433_v25 }
 0x3c3   :  { %1415 = vperm.xlu0 %1620, %v1362_v45  }
 0x3c6   :  { %v1339_v31 = vpop.xlane.xlu1 %1338 }
 0x3c7   :  { %v1364_v16 = vadd.f32 %v1350_v17, %v1339_v31 }
 0x3c8   :  { %v1337_v34 = vpop.xlane.xlu0 %1336 }
 0x3c9   :  { %1421 = vperm.xlu2 %1619, %v1364_v16   ;;  %v1363_v26 = vadd.f32 %v1350_v17, %v1337_v34 }
 0x3cb   :  { %1418 = vperm.xlu1 %1621, %v1363_v26  }
 0x3d0   :  { %v1341_v32 = vpop.xlane.xlu2 %1340 }
 0x3d1   :  { %v1365_v58 = vadd.f32 %v1350_v17, %v1341_v32 }
 0x3d3   :  { %1424 = vperm.xlu0 %1620, %v1365_v58  }
 0x3d6   :  { %v1345_v56 = vpop.xlane.xlu1 %1344 }
 0x3d7   :  { %v1367_v59 = vadd.f32 %v1350_v17, %v1345_v56 }
 0x3d8   :  { %v1343_v62 = vpop.xlane.xlu0 %1342  ;;  %v1392_v57 = vpop.permute.xlu2 %1391 }
 0x3d9   :  { %1430 = vperm.xlu2 %1619, %v1367_v59   ;;  %v1366_v2 = vadd.f32 %v1350_v17, %v1343_v62  ;;  %v1440_v53 = vperm.slane %v1392_v57, %v1439_v3 }
 0x3db   :  { %1427 = vperm.xlu1 %1621, %v1366_v2  }
 0x3eb   :  { %v1398_v60 = vpop.permute.xlu2 %1397  ;;  %v1386_v7 = vpop.permute.xlu0 %1385 }
 0x3ec   :  { %v1434_v4 = vperm.slane %v1386_v7, %v1433_v25  ;;  %v1448_v12 = vperm.slane %v1398_v60, %v1447_v49 }
 0x3f2   :  { %v1389_v11 = vpop.permute.xlu1 %1388 }
 0x3f3   :  { %v1436_v50 = vperm.slane %v1389_v11, %v1435_v1 }
 0x3f5   :  { %v1438_v9 = vsel %vm1437_vm4, %v1436_v50, %v1434_v4 }
 0x3f6   :  { %v1442_v21 = vsel %vm1441_vm5, %v1440_v53, %v1438_v9 }
 0x3fa   :  { %v1395_v22 = vpop.permute.xlu1 %1394 }
 0x3fb   :  { %v1444_v13 = vperm.slane %v1395_v22, %v1443_v46 }
 0x3fd   :  { %v1446_v18 = vsel %vm1445_vm6, %v1444_v13, %v1442_v21 }
 0x3fe   :  { %v1450_v42 = vsel %vm1449_vm7, %v1448_v12, %v1446_v18 }
 0x404   :  { %v1404_v52 = vpop.permute.xlu2 %1403 }
 0x405   :  { %v1456_v40 = vperm.slane %v1404_v52, %v1455_v63 }
 0x40e   :  { %v1401_v20 = vpop.permute.xlu1 %1400 }
 0x40f   :  { %v1452_v48 = vperm.slane %v1401_v20, %v1451_v51 }
 0x411   :  { %v1454_v36 = vsel %vm1453_vm8, %v1452_v48, %v1450_v42 }
 0x412   :  { %v1458_v27 = vsel %vm1457_vm9, %v1456_v40, %v1454_v36 }
 0x414   :  { %v1413_v23 = vpop.permute.xlu2 %1412 }
 0x415   :  { %v1468_v15 = vperm.slane %v1413_v23, %v1467_v44 }
 0x423   :  { %v1422_v6 = vpop.permute.xlu2 %1421 }
 0x424   :  { %v1480_v16 = vperm.slane %v1422_v6, %v1479_v55 }
 0x426   :  { %v1407_v5 = vpop.permute.xlu0 %1406 }
 0x427   :  { %v1460_v17 = vperm.slane %v1407_v5, %v1459_v8 }
 0x429   :  { %v1462_v10 = vsel %vm1461_vm10, %v1460_v17, %v1458_v27 }
 0x42f   :  { %v1410_v38 = vpop.permute.xlu1 %1409 }
 0x430   :  { %v1464_v61 = vperm.slane %v1410_v38, %v1463_v0 }
 0x432   :  { %v1466_v35 = vsel %vm1465_vm11, %v1464_v61, %v1462_v10 }
 0x433   :  { %v1470_v24 = vsel %vm1469_vm12, %v1468_v15, %v1466_v35  ;;  %v1431_v34 = vpop.permute.xlu2 %1430 }
 0x434   :  { %v1492_v56 = vperm.slane %v1431_v34, %v1491_v19 }
 0x435   :  { %v1416_v47 = vpop.permute.xlu0 %1415 }
 0x436   :  { %v1472_v33 = vperm.slane %v1416_v47, %v1471_v28 }
 0x438   :  { %v1474_v43 = vsel %vm1473_vm13, %v1472_v33, %v1470_v24 }
 0x43d   :  { %v1419_v37 = vpop.permute.xlu1 %1418 }
 0x43e   :  { %v1476_v54 = vperm.slane %v1419_v37, %v1475_v14 }
 0x440   :  { %v1478_v45 = vsel %vm1477_vm14, %v1476_v54, %v1474_v43 }
 0x441   :  { %v1482_v32 = vsel %vm1481_vm15, %v1480_v16, %v1478_v45 }
 0x445   :  { %v1425_v41 = vpop.permute.xlu0 %1424 }
 0x446   :  { %v1484_v31 = vperm.slane %v1425_v41, %v1483_v39 }
 0x448   :  { %v1486_v59 = vsel %vm1485_vm0, %v1484_v31, %v1482_v32 }
 0x44d   :  { %v1428_v26 = vpop.permute.xlu1 %1427 }
 0x44e   :  { %v1488_v58 = vperm.slane %v1428_v26, %v1487_v29 }
 0x450   :  { %v1490_v62 = vsel %vm1489_vm1, %v1488_v58, %v1486_v59 }
 0x451   :  { %v1494_v2 = vsel %vm1493_vm2, %v1492_v56, %v1490_v62 }
 0x452   :  { %1496 = vst [vmem:[#allocation3] sm:$0x1] %v1494_v2 }
 0x453   :  { %1507 = dma.vmem_to_hbm [thread:$0]  %s1503_s13, 16, %s1505_s16, [#allocation4]  }
 0x454   :  { %1717 = dma.done.wait [#allocation4], 16  }
 0x455   :  { %1718 = vsyncadd [#allocation4], 4294967280 }
 0x456   :  { %1512 = vsyncpa [#allocation4], 1 }

</bundles_post_ra>
